<compile_context>
chip_gen: v5e
topology: v5e:2x2
jax: 0.10.0
libtpu: 0.0.40
codegen_flags: <defaults>
</compile_context>

<pallas_src>
import functools

import jax
import jax.numpy as jnp
from jax.experimental import pallas as pl
from jax.experimental.pallas import tpu as pltpu

# ------------------------- model hyper-params (small) -------------------------
B = 2             # batch
S = 8             # sequence length
H = 32            # hidden_size (stand-in for 768)
NUM_HEADS = 2
HEAD_DIM = H // NUM_HEADS
FFN = 64
VOCAB = 100
TYPE_VOCAB = 2
NUM_LAYERS = 2
NUM_CLASSES = 7
CLS_PAD = 128     # lane-dense padded classifier width
DR_RATE = 0.5     # inference/eval mode -> dropout is identity


# ------------------------------ fused kernel ----------------------------------
def _layernorm_f32(x, g, b, eps=1e-12):
    x = x.astype(jnp.float32)
    mean = jnp.mean(x, axis=-1, keepdims=True)
    var = jnp.mean(jnp.square(x - mean), axis=-1, keepdims=True)
    return (x - mean) * jax.lax.rsqrt(var + eps) * g + b


def _fused_bert_kernel(valid_ref,                       # scalar prefetch (SMEM)
                       x_ref, emb_g_ref, emb_b_ref,
                       wqkv_ref, bqkv_ref, wo_ref, bo_ref, ln1_g_ref, ln1_b_ref,
                       w1_ref, b1_ref, w2_ref, b2_ref, ln2_g_ref, ln2_b_ref,
                       pool_w_ref, pool_b_ref, cls_w_ref, cls_b_ref,
                       logits_ref,
                       h_ref, bias_ref, *, num_heads):
    layer = pl.program_id(0)
    bsz, seq = bias_ref.shape
    bs, hidden = h_ref.shape
    head_dim = hidden // num_heads
    bf16 = jnp.bfloat16
    f32 = jnp.float32

    # -- layer 0: embedding layernorm into the bf16 VMEM-resident activation,
    #    and the additive attention-mask bias (built once, reused every layer).
    @pl.when(layer == 0)
    def _():
        h_ref[...] = _layernorm_f32(
            x_ref[...], emb_g_ref[...], emb_b_ref[...]).astype(bf16)
        pos = jax.lax.broadcasted_iota(jnp.int32, (1, seq), 1)
        for b in range(bsz):                       # bsz is small & static
            bias_ref[pl.ds(b, 1), :] = jnp.where(
                pos < valid_ref[b], 0.0, -1e9).astype(f32)

    x_bf = h_ref[...]                                          # (B*S, H) bf16
    bias3 = bias_ref[...].reshape(bsz, 1, seq)                 # (B, 1, S) f32

    # fused QKV projection (scale pre-folded into Q weight/bias at pack time)
    qkv = jnp.dot(x_bf, wqkv_ref[...],
                  preferred_element_type=f32) + bqkv_ref[...]  # (B*S, 3H) f32
    qkv_bf = qkv.astype(bf16)

    # per-head attention; ctx_h is folded directly into the output projection
    # (no lane concatenate), accumulating in f32.
    attn_out = None
    for hh in range(num_heads):
        q = qkv_bf[:, hh * head_dim:(hh + 1) * head_dim
                   ].reshape(bsz, seq, head_dim)
        k = qkv_bf[:, hidden + hh * head_dim:
                      hidden + (hh + 1) * head_dim].reshape(bsz, seq, head_dim)
        v = qkv_bf[:, 2 * hidden + hh * head_dim:
                      2 * hidden + (hh + 1) * head_dim].reshape(bsz, seq, head_dim)
        s = jnp.einsum("bqd,bkd->bqk", q, k,
                       preferred_element_type=f32) + bias3     # (B, S, S) f32
        m = jnp.max(s, axis=-1, keepdims=True)
        p = jnp.exp(s - m)
        denom = jnp.sum(p, axis=-1, keepdims=True)
        p = p * pl.reciprocal(denom, approx=True)              # EUP slot
        ctx = jnp.einsum("bqk,bkd->bqd", p.astype(bf16), v,
                         preferred_element_type=f32)           # (B, S, D) f32
        part = jnp.dot(ctx.reshape(bs, head_dim).astype(bf16),
                       wo_ref[hh * head_dim:(hh + 1) * head_dim, :],
                       preferred_element_type=f32)             # (B*S, H) f32
        attn_out = part if attn_out is None else attn_out + part
    attn_out = attn_out + bo_ref[...]

    h1 = _layernorm_f32(x_bf.astype(f32) + attn_out, ln1_g_ref[...], ln1_b_ref[...])

    ffn = jnp.dot(h1.astype(bf16), w1_ref[...],
                  preferred_element_type=f32) + b1_ref[...]
    ffn = jax.nn.gelu(ffn)   # TODO(synk): exact erf GELU for PyTorch parity
    ffn = jnp.dot(ffn.astype(bf16), w2_ref[...],
                  preferred_element_type=f32) + b2_ref[...]
    h2 = _layernorm_f32(h1 + ffn, ln2_g_ref[...], ln2_b_ref[...])
    h_ref[...] = h2.astype(bf16)                               # carried to next layer

    # -- last layer: pooler (tanh) + classifier epilogue (lane-dense output) --
    @pl.when(layer == pl.num_programs(0) - 1)
    def _():
        cls_tok = h2.reshape(bsz, seq, hidden)[:, 0, :]        # (B, H) [CLS]
        pooled = jnp.tanh(jnp.dot(cls_tok.astype(bf16), pool_w_ref[...],
                                  preferred_element_type=f32) + pool_b_ref[...])
        # dropout(p=DR_RATE): inference/eval mode -> identity
        logits_ref[...] = (jnp.dot(pooled.astype(bf16), cls_w_ref[...],
                                   preferred_element_type=f32) + cls_b_ref[...])


# ------------------------------ parameters ------------------------------------
def init_params(key):
    def nrm(k, shape, scale=0.02):
        return scale * jax.random.normal(k, shape, dtype=jnp.float32)

    keys = iter(jax.random.split(key, 64))
    p = {
        "word_emb": nrm(next(keys), (VOCAB, H)),
        "pos_emb": nrm(next(keys), (S, H)),
        "type_emb": nrm(next(keys), (TYPE_VOCAB, H)),
        "emb_ln_g": jnp.ones((H,), jnp.float32),
        "emb_ln_b": jnp.zeros((H,), jnp.float32),
        "pooler_w": nrm(next(keys), (H, H)),
        "pooler_b": jnp.zeros((H,), jnp.float32),
        "cls_w": nrm(next(keys), (H, NUM_CLASSES)),
        "cls_b": jnp.zeros((NUM_CLASSES,), jnp.float32),
        "layers": [],
    }
    for _ in range(NUM_LAYERS):
        p["layers"].append({
            "wq": nrm(next(keys), (H, H)), "bq": jnp.zeros((H,), jnp.float32),
            "wk": nrm(next(keys), (H, H)), "bk": jnp.zeros((H,), jnp.float32),
            "wv": nrm(next(keys), (H, H)), "bv": jnp.zeros((H,), jnp.float32),
            "wo": nrm(next(keys), (H, H)), "bo": jnp.zeros((H,), jnp.float32),
            "ln1_g": jnp.ones((H,), jnp.float32), "ln1_b": jnp.zeros((H,), jnp.float32),
            "w1": nrm(next(keys), (H, FFN)), "b1": jnp.zeros((FFN,), jnp.float32),
            "w2": nrm(next(keys), (FFN, H)), "b2": jnp.zeros((H,), jnp.float32),
            "ln2_g": jnp.ones((H,), jnp.float32), "ln2_b": jnp.zeros((H,), jnp.float32),
        })
    return p


def pack_params(raw):
    """Stack per-layer weights, fuse QKV (scale folded into Q), bf16 matmul
    operands, lane-dense padded classifier."""
    L = raw["layers"]
    stack = lambda name: jnp.stack([l[name] for l in L])
    scale = 1.0 / (HEAD_DIM ** 0.5)
    return {
        "word_emb": raw["word_emb"],
        "pos_emb": raw["pos_emb"],
        "type_emb": raw["type_emb"],
        "emb_ln_g": raw["emb_ln_g"].reshape(1, H),
        "emb_ln_b": raw["emb_ln_b"].reshape(1, H),
        # fused QKV: (L, H, 3H) bf16 with 1/sqrt(D) folded into the Q columns
        "wqkv": jnp.stack([jnp.concatenate(
                    [l["wq"] * scale, l["wk"], l["wv"]], axis=1)
                    for l in L]).astype(jnp.bfloat16),
        "bqkv": jnp.stack([jnp.concatenate(
                    [l["bq"] * scale, l["bk"], l["bv"]])[None, :]
                    for l in L]),
        "wo": stack("wo").astype(jnp.bfloat16),
        "bo": stack("bo")[:, None, :],
        "ln1_g": stack("ln1_g")[:, None, :],
        "ln1_b": stack("ln1_b")[:, None, :],
        "w1": stack("w1").astype(jnp.bfloat16),
        "b1": stack("b1")[:, None, :],
        "w2": stack("w2").astype(jnp.bfloat16),
        "b2": stack("b2")[:, None, :],
        "ln2_g": stack("ln2_g")[:, None, :],
        "ln2_b": stack("ln2_b")[:, None, :],
        "pooler_w": raw["pooler_w"].astype(jnp.bfloat16),
        "pooler_b": raw["pooler_b"].reshape(1, H),
        # classifier padded to a lane-dense 128-wide output (sliced in wrapper)
        "cls_w": jnp.zeros((H, CLS_PAD), jnp.float32)
                    .at[:, :NUM_CLASSES].set(raw["cls_w"]).astype(jnp.bfloat16),
        "cls_b": jnp.zeros((1, CLS_PAD), jnp.float32)
                    .at[0, :NUM_CLASSES].set(raw["cls_b"]),
    }


# ------------------------------ forward pass -----------------------------------
def bert_classifier_forward(packed, token_ids, valid_length, segment_ids):
    bsz, seq = token_ids.shape

    # embedding gathers are glue (data-dependent gather; kept in XLA)
    x = (packed["word_emb"][token_ids]
         + packed["pos_emb"][None, :seq, :]
         + packed["type_emb"][segment_ids.astype(jnp.int32)]
         ).reshape(bsz * seq, H).astype(jnp.float32)
    # TODO(synk): on v7x pass x via memory_space=pl.ANY + manual DMA so the f32
    # slab doesn't stay VMEM-resident across all layers.
    valid_1d = valid_length.astype(jnp.int32).reshape(bsz)

    fixed = lambda shp: pl.BlockSpec(shp, lambda l, vl: (0, 0))
    per_layer = lambda r, c: pl.BlockSpec((None, r, c), lambda l, vl: (l, 0, 0))

    grid_spec = pltpu.PrefetchScalarGridSpec(
        num_scalar_prefetch=1,                      # valid_length -> SMEM
        grid=(NUM_LAYERS,),
        in_specs=[
            fixed((bsz * seq, H)),                  # embedded input (layer 0)
            fixed((1, H)), fixed((1, H)),           # embedding LN
            per_layer(H, 3 * H), per_layer(1, 3 * H),   # fused QKV (scaled Q)
            per_layer(H, H), per_layer(1, H),           # attn out proj
            per_layer(1, H), per_layer(1, H),           # LN1
            per_layer(H, FFN), per_layer(1, FFN),       # FFN in
            per_layer(FFN, H), per_layer(1, H),         # FFN out
            per_layer(1, H), per_layer(1, H),           # LN2
            fixed((H, H)), fixed((1, H)),               # pooler
            fixed((H, CLS_PAD)), fixed((1, CLS_PAD)),   # classifier (padded)
        ],
        out_specs=pl.BlockSpec((bsz, CLS_PAD), lambda l, vl: (0, 0)),
        scratch_shapes=[
            pltpu.VMEM((bsz * seq, H), jnp.bfloat16),   # layer-carried activations
            pltpu.VMEM((bsz, seq), jnp.float32),        # attention-mask bias
        ],
    )

    logits_pad = pl.pallas_call(
        functools.partial(_fused_bert_kernel, num_heads=NUM_HEADS),
        grid_spec=grid_spec,
        out_shape=jax.ShapeDtypeStruct((bsz, CLS_PAD), jnp.float32),
        compiler_params=pltpu.CompilerParams(
            dimension_semantics=("arbitrary",),     # layers are sequential (carry)
            # headroom for double-buffered per-layer weights at real BERT sizes
            vmem_limit_bytes=64 * 1024 * 1024),
        # TODO(synk): v7x: add a leading "parallel" batch grid axis to use the
        # second TensorCore (neutral on v5e/v6e, weight-DMA-bound here).
    )(valid_1d, x,
      packed["emb_ln_g"], packed["emb_ln_b"],
      packed["wqkv"], packed["bqkv"], packed["wo"], packed["bo"],
      packed["ln1_g"], packed["ln1_b"],
      packed["w1"], packed["b1"], packed["w2"], packed["b2"],
      packed["ln2_g"], packed["ln2_b"],
      packed["pooler_w"], packed["pooler_b"],
      packed["cls_w"], packed["cls_b"])

    return logits_pad[:, :NUM_CLASSES]


# ------------------------------------ main --------------------------------------
if __name__ == "__main__":
    key = jax.random.PRNGKey(0)
    k_params, k_tok = jax.random.split(key)

    params = pack_params(init_params(k_params))
    token_ids = jax.random.randint(k_tok, (B, S), 0, VOCAB, dtype=jnp.int32)
    valid_length = jnp.array([5, S], dtype=jnp.int32)
    segment_ids = jnp.zeros((B, S), dtype=jnp.int32)

    fwd = jax.jit(bert_classifier_forward)
    logits = fwd(params, token_ids, valid_length, segment_ids)
    logits = jax.block_until_ready(logits)

    assert logits.shape == (B, NUM_CLASSES)
    assert bool(jnp.all(jnp.isfinite(logits)))
    print("KERNEL_OK")
</pallas_src>

<mosaic_0001>
module attributes {stable_mosaic.version = 11 : i64} {
  func.func @_fused_bert_kernel(%arg0: i32, %arg1: memref<2xi32, #tpu.memory_space<smem>>, %arg2: memref<16x32xf32, #tpu.memory_space<vmem>>, %arg3: memref<1x32xf32, #tpu.memory_space<vmem>>, %arg4: memref<1x32xf32, #tpu.memory_space<vmem>>, %arg5: memref<1x32x96xbf16, #tpu.memory_space<vmem>>, %arg6: memref<1x1x96xf32, #tpu.memory_space<vmem>>, %arg7: memref<1x32x32xbf16, #tpu.memory_space<vmem>>, %arg8: memref<1x1x32xf32, #tpu.memory_space<vmem>>, %arg9: memref<1x1x32xf32, #tpu.memory_space<vmem>>, %arg10: memref<1x1x32xf32, #tpu.memory_space<vmem>>, %arg11: memref<1x32x64xbf16, #tpu.memory_space<vmem>>, %arg12: memref<1x1x64xf32, #tpu.memory_space<vmem>>, %arg13: memref<1x64x32xbf16, #tpu.memory_space<vmem>>, %arg14: memref<1x1x32xf32, #tpu.memory_space<vmem>>, %arg15: memref<1x1x32xf32, #tpu.memory_space<vmem>>, %arg16: memref<1x1x32xf32, #tpu.memory_space<vmem>>, %arg17: memref<32x32xbf16, #tpu.memory_space<vmem>>, %arg18: memref<1x32xf32, #tpu.memory_space<vmem>>, %arg19: memref<32x128xbf16, #tpu.memory_space<vmem>>, %arg20: memref<1x128xf32, #tpu.memory_space<vmem>>, %arg21: memref<2x128xf32, #tpu.memory_space<vmem>>, %arg22: memref<16x32xbf16, #tpu.memory_space<vmem>>, %arg23: memref<2x8xf32, #tpu.memory_space<vmem>>) attributes {dimension_semantics = [#tpu.dimension_semantics<arbitrary>], iteration_bounds = array<i64: 2>, scalar_prefetch = 1 : i64, scratch_operands = 2 : i64, tpu.core_type = #tpu.core_type<tc>, window_params = [{pipeline_mode = #tpu.pipeline_mode<synchronous>, transform_indices = @transform_0, window_bounds = array<i64: 16, 32>}, {pipeline_mode = #tpu.pipeline_mode<synchronous>, transform_indices = @transform_1, window_bounds = array<i64: 1, 32>}, {pipeline_mode = #tpu.pipeline_mode<synchronous>, transform_indices = @transform_2, window_bounds = array<i64: 1, 32>}, {transform_indices = @transform_3, window_bounds = array<i64: 1, 32, 96>}, {transform_indices = @transform_4, window_bounds = array<i64: 1, 1, 96>}, {transform_indices = @transform_5, window_bounds = array<i64: 1, 32, 32>}, {transform_indices = @transform_6, window_bounds = array<i64: 1, 1, 32>}, {transform_indices = @transform_7, window_bounds = array<i64: 1, 1, 32>}, {transform_indices = @transform_8, window_bounds = array<i64: 1, 1, 32>}, {transform_indices = @transform_9, window_bounds = array<i64: 1, 32, 64>}, {transform_indices = @transform_10, window_bounds = array<i64: 1, 1, 64>}, {transform_indices = @transform_11, window_bounds = array<i64: 1, 64, 32>}, {transform_indices = @transform_12, window_bounds = array<i64: 1, 1, 32>}, {transform_indices = @transform_13, window_bounds = array<i64: 1, 1, 32>}, {transform_indices = @transform_14, window_bounds = array<i64: 1, 1, 32>}, {pipeline_mode = #tpu.pipeline_mode<synchronous>, transform_indices = @transform_15, window_bounds = array<i64: 32, 32>}, {pipeline_mode = #tpu.pipeline_mode<synchronous>, transform_indices = @transform_16, window_bounds = array<i64: 1, 32>}, {pipeline_mode = #tpu.pipeline_mode<synchronous>, transform_indices = @transform_17, window_bounds = array<i64: 32, 128>}, {pipeline_mode = #tpu.pipeline_mode<synchronous>, transform_indices = @transform_18, window_bounds = array<i64: 1, 128>}, {pipeline_mode = #tpu.pipeline_mode<synchronous>, transform_indices = @transform_19, window_bounds = array<i64: 2, 128>}]} {
    %c0_i32 = arith.constant 0 : i32
    %0 = arith.cmpi eq, %arg0, %c0_i32 : i32
    %1 = arith.extui %0 : i1 to i32
    %c0_i32_0 = arith.constant 0 : i32
    %2 = arith.cmpi ne, %1, %c0_i32_0 : i32
    scf.if %2 {
      %c0_71 = arith.constant 0 : index
      %c0_72 = arith.constant 0 : index
      %160 = vector.load %arg2[%c0_71, %c0_72] : memref<16x32xf32, #tpu.memory_space<vmem>>, vector<16x32xf32>
      %c0_73 = arith.constant 0 : index
      %c0_74 = arith.constant 0 : index
      %161 = vector.load %arg3[%c0_73, %c0_74] : memref<1x32xf32, #tpu.memory_space<vmem>>, vector<1x32xf32>
      %c0_75 = arith.constant 0 : index
      %c0_76 = arith.constant 0 : index
      %162 = vector.load %arg4[%c0_75, %c0_76] : memref<1x32xf32, #tpu.memory_space<vmem>>, vector<1x32xf32>
      %cst_77 = arith.constant dense<0.000000e+00> : vector<16xf32>
      %163 = vector.multi_reduction <add>, %160, %cst_77 [1] : vector<16x32xf32> to vector<16xf32>
      %164 = vector.shape_cast %163 : vector<16xf32> to vector<16x1xf32>
      %cst_78 = arith.constant 3.200000e+01 : f32
      %165 = vector.broadcast %cst_78 : f32 to vector<16x1xf32>
      %166 = arith.divf %164, %165 : vector<16x1xf32>
      %167 = vector.broadcast %166 : vector<16x1xf32> to vector<16x32xf32>
      %168 = arith.subf %160, %167 : vector<16x32xf32>
      %169 = arith.mulf %168, %168 : vector<16x32xf32>
      %cst_79 = arith.constant dense<0.000000e+00> : vector<16xf32>
      %170 = vector.multi_reduction <add>, %169, %cst_79 [1] : vector<16x32xf32> to vector<16xf32>
      %171 = vector.shape_cast %170 : vector<16xf32> to vector<16x1xf32>
      %cst_80 = arith.constant 3.200000e+01 : f32
      %172 = vector.broadcast %cst_80 : f32 to vector<16x1xf32>
      %173 = arith.divf %171, %172 : vector<16x1xf32>
      %174 = vector.broadcast %166 : vector<16x1xf32> to vector<16x32xf32>
      %175 = arith.subf %160, %174 : vector<16x32xf32>
      %cst_81 = arith.constant 9.99999996E-13 : f32
      %176 = vector.broadcast %cst_81 : f32 to vector<16x1xf32>
      %177 = arith.addf %173, %176 : vector<16x1xf32>
      %178 = math.rsqrt %177 : vector<16x1xf32>
      %179 = vector.broadcast %178 : vector<16x1xf32> to vector<16x32xf32>
      %180 = arith.mulf %175, %179 : vector<16x32xf32>
      %181 = vector.broadcast %161 : vector<1x32xf32> to vector<16x32xf32>
      %182 = arith.mulf %180, %181 : vector<16x32xf32>
      %183 = vector.broadcast %162 : vector<1x32xf32> to vector<16x32xf32>
      %184 = arith.addf %182, %183 : vector<16x32xf32>
      %185 = arith.truncf %184 : vector<16x32xf32> to vector<16x32xbf16>
      %c0_82 = arith.constant 0 : index
      %c0_83 = arith.constant 0 : index
      %186 = vector.load %arg22[%c0_82, %c0_83] : memref<16x32xbf16, #tpu.memory_space<vmem>>, vector<16x32xbf16>
      tpu.vector_store %arg22[%c0_82, %c0_83], %185 {strides = array<i32>} : memref<16x32xbf16, #tpu.memory_space<vmem>>, vector<16x32xbf16>,
      %187 = tpu.iota {dimensions = array<i32: 1>} : vector<1x8xi32>
      %c0_84 = arith.constant 0 : index
      %188 = memref.load %arg1[%c0_84] : memref<2xi32, #tpu.memory_space<smem>>
      %189 = vector.broadcast %188 : i32 to vector<1x8xi32>
      %190 = arith.cmpi slt, %187, %189 : vector<1x8xi32>
      %cst_85 = arith.constant 0.000000e+00 : f32
      %cst_86 = arith.constant -1.000000e+09 : f32
      %191 = vector.broadcast %cst_85 : f32 to vector<1x8xf32>
      %192 = vector.broadcast %cst_86 : f32 to vector<1x8xf32>
      %193 = arith.select %190, %191, %192 : vector<1x8xi1>, vector<1x8xf32>
      %c0_87 = arith.constant 0 : index
      %c0_88 = arith.constant 0 : index
      %194 = vector.load %arg23[%c0_87, %c0_88] : memref<2x8xf32, #tpu.memory_space<vmem>>, vector<1x8xf32>
      tpu.vector_store %arg23[%c0_87, %c0_88], %193 {strides = array<i32>} : memref<2x8xf32, #tpu.memory_space<vmem>>, vector<1x8xf32>,
      %c1 = arith.constant 1 : index
      %195 = memref.load %arg1[%c1] : memref<2xi32, #tpu.memory_space<smem>>
      %196 = vector.broadcast %195 : i32 to vector<1x8xi32>
      %197 = arith.cmpi slt, %187, %196 : vector<1x8xi32>
      %cst_89 = arith.constant 0.000000e+00 : f32
      %cst_90 = arith.constant -1.000000e+09 : f32
      %198 = vector.broadcast %cst_89 : f32 to vector<1x8xf32>
      %199 = vector.broadcast %cst_90 : f32 to vector<1x8xf32>
      %200 = arith.select %197, %198, %199 : vector<1x8xi1>, vector<1x8xf32>
      %c1_91 = arith.constant 1 : index
      %c0_92 = arith.constant 0 : index
      %201 = vector.load %arg23[%c1_91, %c0_92] : memref<2x8xf32, #tpu.memory_space<vmem>>, vector<1x8xf32>
      tpu.vector_store %arg23[%c1_91, %c0_92], %200 {strides = array<i32>} : memref<2x8xf32, #tpu.memory_space<vmem>>, vector<1x8xf32>,
    } else {
    }
    %c0 = arith.constant 0 : index
    %c0_1 = arith.constant 0 : index
    %3 = vector.load %arg22[%c0, %c0_1] : memref<16x32xbf16, #tpu.memory_space<vmem>>, vector<16x32xbf16>
    %c0_2 = arith.constant 0 : index
    %c0_3 = arith.constant 0 : index
    %4 = vector.load %arg23[%c0_2, %c0_3] : memref<2x8xf32, #tpu.memory_space<vmem>>, vector<2x8xf32>
    %5 = vector.shape_cast %4 : vector<2x8xf32> to vector<2x1x8xf32>
    %c0_4 = arith.constant 0 : index
    %c0_5 = arith.constant 0 : index
    %c0_6 = arith.constant 0 : index
    %6 = vector.load %arg5[%c0_4, %c0_5, %c0_6] : memref<1x32x96xbf16, #tpu.memory_space<vmem>>, vector<1x32x96xbf16>
    %7 = vector.shape_cast %6 : vector<1x32x96xbf16> to vector<32x96xbf16>
    %cst = arith.constant dense<0.000000e+00> : vector<16x96xf32>
    %8 = tpu.matmul %3, %7, %cst {dimension_numbers = #tpu.dot_dimension_numbers<[1], [0], [0], [1], [0, 0, 1, 1], [], []>} : vector<16x32xbf16>, vector<32x96xbf16>, vector<16x96xf32> -> vector<16x96xf32>
    %c0_7 = arith.constant 0 : index
    %c0_8 = arith.constant 0 : index
    %c0_9 = arith.constant 0 : index
    %9 = vector.load %arg6[%c0_7, %c0_8, %c0_9] : memref<1x1x96xf32, #tpu.memory_space<vmem>>, vector<1x1x96xf32>
    %10 = vector.shape_cast %9 : vector<1x1x96xf32> to vector<1x96xf32>
    %11 = vector.broadcast %10 : vector<1x96xf32> to vector<16x96xf32>
    %12 = arith.addf %8, %11 : vector<16x96xf32>
    %13 = arith.truncf %12 : vector<16x96xf32> to vector<16x96xbf16>
    %14 = vector.extract_strided_slice %13 {offsets = [0, 0], sizes = [16, 16], strides = [1, 1]} : vector<16x96xbf16> to vector<16x16xbf16>
    %15 = vector.shape_cast %14 : vector<16x16xbf16> to vector<2x8x16xbf16>
    %16 = vector.extract_strided_slice %13 {offsets = [0, 32], sizes = [16, 16], strides = [1, 1]} : vector<16x96xbf16> to vector<16x16xbf16>
    %17 = vector.shape_cast %16 : vector<16x16xbf16> to vector<2x8x16xbf16>
    %18 = vector.extract_strided_slice %13 {offsets = [0, 64], sizes = [16, 16], strides = [1, 1]} : vector<16x96xbf16> to vector<16x16xbf16>
    %19 = vector.shape_cast %18 : vector<16x16xbf16> to vector<2x8x16xbf16>
    "tpu.trace_start"() <{level = 10 : i32, message = "bqd,bkd->bqk"}> : () -> ()
    %cst_10 = arith.constant dense<0.000000e+00> : vector<2x8x8xf32>
    %20 = tpu.matmul %15, %17, %cst_10 {dimension_numbers = #tpu.dot_dimension_numbers<[2], [2], [1], [1], [0, 0, 0, 1, 1, 1], [0], [0]>} : vector<2x8x16xbf16>, vector<2x8x16xbf16>, vector<2x8x8xf32> -> vector<2x8x8xf32>
    "tpu.trace_stop"() : () -> ()
    %21 = vector.broadcast %5 : vector<2x1x8xf32> to vector<2x8x8xf32>
    %22 = arith.addf %20, %21 : vector<2x8x8xf32>
    %cst_11 = arith.constant dense<0xFF800000> : vector<2x8xf32>
    %23 = vector.multi_reduction <maximumf>, %22, %cst_11 [2] : vector<2x8x8xf32> to vector<2x8xf32>
    %24 = vector.shape_cast %23 : vector<2x8xf32> to vector<2x8x1xf32>
    %25 = vector.broadcast %24 : vector<2x8x1xf32> to vector<2x8x8xf32>
    %26 = arith.subf %22, %25 : vector<2x8x8xf32>
    %27 = math.exp %26 : vector<2x8x8xf32>
    %cst_12 = arith.constant dense<0.000000e+00> : vector<2x8xf32>
    %28 = vector.multi_reduction <add>, %27, %cst_12 [2] : vector<2x8x8xf32> to vector<2x8xf32>
    %29 = vector.shape_cast %28 : vector<2x8xf32> to vector<2x8x1xf32>
    %30 = tpu.reciprocal %29 {approx = true} : vector<2x8x1xf32> -> vector<2x8x1xf32>
    %31 = vector.broadcast %30 : vector<2x8x1xf32> to vector<2x8x8xf32>
    %32 = arith.mulf %27, %31 : vector<2x8x8xf32>
    %33 = arith.truncf %32 : vector<2x8x8xf32> to vector<2x8x8xbf16>
    "tpu.trace_start"() <{level = 10 : i32, message = "bqk,bkd->bqd"}> : () -> ()
    %cst_13 = arith.constant dense<0.000000e+00> : vector<2x8x16xf32>
    %34 = tpu.matmul %33, %19, %cst_13 {dimension_numbers = #tpu.dot_dimension_numbers<[2], [1], [1], [2], [0, 0, 0, 1, 1, 2], [0], [0]>} : vector<2x8x8xbf16>, vector<2x8x16xbf16>, vector<2x8x16xf32> -> vector<2x8x16xf32>
    "tpu.trace_stop"() : () -> ()
    %35 = vector.shape_cast %34 : vector<2x8x16xf32> to vector<16x16xf32>
    %36 = arith.truncf %35 : vector<16x16xf32> to vector<16x16xbf16>
    %c0_14 = arith.constant 0 : index
    %c0_15 = arith.constant 0 : index
    %c0_16 = arith.constant 0 : index
    %37 = vector.load %arg7[%c0_14, %c0_15, %c0_16] : memref<1x32x32xbf16, #tpu.memory_space<vmem>>, vector<1x16x32xbf16>
    %38 = vector.shape_cast %37 : vector<1x16x32xbf16> to vector<16x32xbf16>
    %cst_17 = arith.constant dense<0.000000e+00> : vector<16x32xf32>
    %39 = tpu.matmul %36, %38, %cst_17 {dimension_numbers = #tpu.dot_dimension_numbers<[1], [0], [0], [1], [0, 0, 1, 1], [], []>} : vector<16x16xbf16>, vector<16x32xbf16>, vector<16x32xf32> -> vector<16x32xf32>
    %40 = vector.extract_strided_slice %13 {offsets = [0, 16], sizes = [16, 16], strides = [1, 1]} : vector<16x96xbf16> to vector<16x16xbf16>
    %41 = vector.shape_cast %40 : vector<16x16xbf16> to vector<2x8x16xbf16>
    %42 = vector.extract_strided_slice %13 {offsets = [0, 48], sizes = [16, 16], strides = [1, 1]} : vector<16x96xbf16> to vector<16x16xbf16>
    %43 = vector.shape_cast %42 : vector<16x16xbf16> to vector<2x8x16xbf16>
    %44 = vector.extract_strided_slice %13 {offsets = [0, 80], sizes = [16, 16], strides = [1, 1]} : vector<16x96xbf16> to vector<16x16xbf16>
    %45 = vector.shape_cast %44 : vector<16x16xbf16> to vector<2x8x16xbf16>
    "tpu.trace_start"() <{level = 10 : i32, message = "bqd,bkd->bqk"}> : () -> ()
    %cst_18 = arith.constant dense<0.000000e+00> : vector<2x8x8xf32>
    %46 = tpu.matmul %41, %43, %cst_18 {dimension_numbers = #tpu.dot_dimension_numbers<[2], [2], [1], [1], [0, 0, 0, 1, 1, 1], [0], [0]>} : vector<2x8x16xbf16>, vector<2x8x16xbf16>, vector<2x8x8xf32> -> vector<2x8x8xf32>
    "tpu.trace_stop"() : () -> ()
    %47 = vector.broadcast %5 : vector<2x1x8xf32> to vector<2x8x8xf32>
    %48 = arith.addf %46, %47 : vector<2x8x8xf32>
    %cst_19 = arith.constant dense<0xFF800000> : vector<2x8xf32>
    %49 = vector.multi_reduction <maximumf>, %48, %cst_19 [2] : vector<2x8x8xf32> to vector<2x8xf32>
    %50 = vector.shape_cast %49 : vector<2x8xf32> to vector<2x8x1xf32>
    %51 = vector.broadcast %50 : vector<2x8x1xf32> to vector<2x8x8xf32>
    %52 = arith.subf %48, %51 : vector<2x8x8xf32>
    %53 = math.exp %52 : vector<2x8x8xf32>
    %cst_20 = arith.constant dense<0.000000e+00> : vector<2x8xf32>
    %54 = vector.multi_reduction <add>, %53, %cst_20 [2] : vector<2x8x8xf32> to vector<2x8xf32>
    %55 = vector.shape_cast %54 : vector<2x8xf32> to vector<2x8x1xf32>
    %56 = tpu.reciprocal %55 {approx = true} : vector<2x8x1xf32> -> vector<2x8x1xf32>
    %57 = vector.broadcast %56 : vector<2x8x1xf32> to vector<2x8x8xf32>
    %58 = arith.mulf %53, %57 : vector<2x8x8xf32>
    %59 = arith.truncf %58 : vector<2x8x8xf32> to vector<2x8x8xbf16>
    "tpu.trace_start"() <{level = 10 : i32, message = "bqk,bkd->bqd"}> : () -> ()
    %cst_21 = arith.constant dense<0.000000e+00> : vector<2x8x16xf32>
    %60 = tpu.matmul %59, %45, %cst_21 {dimension_numbers = #tpu.dot_dimension_numbers<[2], [1], [1], [2], [0, 0, 0, 1, 1, 2], [0], [0]>} : vector<2x8x8xbf16>, vector<2x8x16xbf16>, vector<2x8x16xf32> -> vector<2x8x16xf32>
    "tpu.trace_stop"() : () -> ()
    %61 = vector.shape_cast %60 : vector<2x8x16xf32> to vector<16x16xf32>
    %62 = arith.truncf %61 : vector<16x16xf32> to vector<16x16xbf16>
    %c0_22 = arith.constant 0 : index
    %c16 = arith.constant 16 : index
    %c0_23 = arith.constant 0 : index
    %63 = vector.load %arg7[%c0_22, %c16, %c0_23] : memref<1x32x32xbf16, #tpu.memory_space<vmem>>, vector<1x16x32xbf16>
    %64 = vector.shape_cast %63 : vector<1x16x32xbf16> to vector<16x32xbf16>
    %cst_24 = arith.constant dense<0.000000e+00> : vector<16x32xf32>
    %65 = tpu.matmul %62, %64, %cst_24 {dimension_numbers = #tpu.dot_dimension_numbers<[1], [0], [0], [1], [0, 0, 1, 1], [], []>} : vector<16x16xbf16>, vector<16x32xbf16>, vector<16x32xf32> -> vector<16x32xf32>
    %66 = arith.addf %39, %65 : vector<16x32xf32>
    %c0_25 = arith.constant 0 : index
    %c0_26 = arith.constant 0 : index
    %c0_27 = arith.constant 0 : index
    %67 = vector.load %arg8[%c0_25, %c0_26, %c0_27] : memref<1x1x32xf32, #tpu.memory_space<vmem>>, vector<1x1x32xf32>
    %68 = vector.shape_cast %67 : vector<1x1x32xf32> to vector<1x32xf32>
    %69 = vector.broadcast %68 : vector<1x32xf32> to vector<16x32xf32>
    %70 = arith.addf %66, %69 : vector<16x32xf32>
    %71 = arith.extf %3 : vector<16x32xbf16> to vector<16x32xf32>
    %72 = arith.addf %71, %70 : vector<16x32xf32>
    %c0_28 = arith.constant 0 : index
    %c0_29 = arith.constant 0 : index
    %c0_30 = arith.constant 0 : index
    %73 = vector.load %arg9[%c0_28, %c0_29, %c0_30] : memref<1x1x32xf32, #tpu.memory_space<vmem>>, vector<1x1x32xf32>
    %74 = vector.shape_cast %73 : vector<1x1x32xf32> to vector<1x32xf32>
    %c0_31 = arith.constant 0 : index
    %c0_32 = arith.constant 0 : index
    %c0_33 = arith.constant 0 : index
    %75 = vector.load %arg10[%c0_31, %c0_32, %c0_33] : memref<1x1x32xf32, #tpu.memory_space<vmem>>, vector<1x1x32xf32>
    %76 = vector.shape_cast %75 : vector<1x1x32xf32> to vector<1x32xf32>
    %cst_34 = arith.constant dense<0.000000e+00> : vector<16xf32>
    %77 = vector.multi_reduction <add>, %72, %cst_34 [1] : vector<16x32xf32> to vector<16xf32>
    %78 = vector.shape_cast %77 : vector<16xf32> to vector<16x1xf32>
    %cst_35 = arith.constant 3.200000e+01 : f32
    %79 = vector.broadcast %cst_35 : f32 to vector<16x1xf32>
    %80 = arith.divf %78, %79 : vector<16x1xf32>
    %81 = vector.broadcast %80 : vector<16x1xf32> to vector<16x32xf32>
    %82 = arith.subf %72, %81 : vector<16x32xf32>
    %83 = arith.mulf %82, %82 : vector<16x32xf32>
    %cst_36 = arith.constant dense<0.000000e+00> : vector<16xf32>
    %84 = vector.multi_reduction <add>, %83, %cst_36 [1] : vector<16x32xf32> to vector<16xf32>
    %85 = vector.shape_cast %84 : vector<16xf32> to vector<16x1xf32>
    %cst_37 = arith.constant 3.200000e+01 : f32
    %86 = vector.broadcast %cst_37 : f32 to vector<16x1xf32>
    %87 = arith.divf %85, %86 : vector<16x1xf32>
    %88 = vector.broadcast %80 : vector<16x1xf32> to vector<16x32xf32>
    %89 = arith.subf %72, %88 : vector<16x32xf32>
    %cst_38 = arith.constant 9.99999996E-13 : f32
    %90 = vector.broadcast %cst_38 : f32 to vector<16x1xf32>
    %91 = arith.addf %87, %90 : vector<16x1xf32>
    %92 = math.rsqrt %91 : vector<16x1xf32>
    %93 = vector.broadcast %92 : vector<16x1xf32> to vector<16x32xf32>
    %94 = arith.mulf %89, %93 : vector<16x32xf32>
    %95 = vector.broadcast %74 : vector<1x32xf32> to vector<16x32xf32>
    %96 = arith.mulf %94, %95 : vector<16x32xf32>
    %97 = vector.broadcast %76 : vector<1x32xf32> to vector<16x32xf32>
    %98 = arith.addf %96, %97 : vector<16x32xf32>
    %99 = arith.truncf %98 : vector<16x32xf32> to vector<16x32xbf16>
    %c0_39 = arith.constant 0 : index
    %c0_40 = arith.constant 0 : index
    %c0_41 = arith.constant 0 : index
    %100 = vector.load %arg11[%c0_39, %c0_40, %c0_41] : memref<1x32x64xbf16, #tpu.memory_space<vmem>>, vector<1x32x64xbf16>
    %101 = vector.shape_cast %100 : vector<1x32x64xbf16> to vector<32x64xbf16>
    %cst_42 = arith.constant dense<0.000000e+00> : vector<16x64xf32>
    %102 = tpu.matmul %99, %101, %cst_42 {dimension_numbers = #tpu.dot_dimension_numbers<[1], [0], [0], [1], [0, 0, 1, 1], [], []>} : vector<16x32xbf16>, vector<32x64xbf16>, vector<16x64xf32> -> vector<16x64xf32>
    %c0_43 = arith.constant 0 : index
    %c0_44 = arith.constant 0 : index
    %c0_45 = arith.constant 0 : index
    %103 = vector.load %arg12[%c0_43, %c0_44, %c0_45] : memref<1x1x64xf32, #tpu.memory_space<vmem>>, vector<1x1x64xf32>
    %104 = vector.shape_cast %103 : vector<1x1x64xf32> to vector<1x64xf32>
    %105 = vector.broadcast %104 : vector<1x64xf32> to vector<16x64xf32>
    %106 = arith.addf %102, %105 : vector<16x64xf32>
    %107 = arith.mulf %106, %106 : vector<16x64xf32>
    %108 = arith.mulf %106, %107 : vector<16x64xf32>
    %cst_46 = arith.constant 4.471500e-02 : f32
    %109 = vector.broadcast %cst_46 : f32 to vector<16x64xf32>
    %110 = arith.mulf %109, %108 : vector<16x64xf32>
    %111 = arith.addf %106, %110 : vector<16x64xf32>
    %cst_47 = arith.constant 0.797884583 : f32
    %112 = vector.broadcast %cst_47 : f32 to vector<16x64xf32>
    %113 = arith.mulf %112, %111 : vector<16x64xf32>
    %114 = math.tanh %113 : vector<16x64xf32>
    %cst_48 = arith.constant 1.000000e+00 : f32
    %115 = vector.broadcast %cst_48 : f32 to vector<16x64xf32>
    %116 = arith.addf %115, %114 : vector<16x64xf32>
    %cst_49 = arith.constant 5.000000e-01 : f32
    %117 = vector.broadcast %cst_49 : f32 to vector<16x64xf32>
    %118 = arith.mulf %117, %116 : vector<16x64xf32>
    %119 = arith.mulf %106, %118 : vector<16x64xf32>
    %120 = arith.truncf %119 : vector<16x64xf32> to vector<16x64xbf16>
    %c0_50 = arith.constant 0 : index
    %c0_51 = arith.constant 0 : index
    %c0_52 = arith.constant 0 : index
    %121 = vector.load %arg13[%c0_50, %c0_51, %c0_52] : memref<1x64x32xbf16, #tpu.memory_space<vmem>>, vector<1x64x32xbf16>
    %122 = vector.shape_cast %121 : vector<1x64x32xbf16> to vector<64x32xbf16>
    %cst_53 = arith.constant dense<0.000000e+00> : vector<16x32xf32>
    %123 = tpu.matmul %120, %122, %cst_53 {dimension_numbers = #tpu.dot_dimension_numbers<[1], [0], [0], [1], [0, 0, 1, 1], [], []>} : vector<16x64xbf16>, vector<64x32xbf16>, vector<16x32xf32> -> vector<16x32xf32>
    %c0_54 = arith.constant 0 : index
    %c0_55 = arith.constant 0 : index
    %c0_56 = arith.constant 0 : index
    %124 = vector.load %arg14[%c0_54, %c0_55, %c0_56] : memref<1x1x32xf32, #tpu.memory_space<vmem>>, vector<1x1x32xf32>
    %125 = vector.shape_cast %124 : vector<1x1x32xf32> to vector<1x32xf32>
    %126 = vector.broadcast %125 : vector<1x32xf32> to vector<16x32xf32>
    %127 = arith.addf %123, %126 : vector<16x32xf32>
    %128 = arith.addf %98, %127 : vector<16x32xf32>
    %c0_57 = arith.constant 0 : index
    %c0_58 = arith.constant 0 : index
    %c0_59 = arith.constant 0 : index
    %129 = vector.load %arg15[%c0_57, %c0_58, %c0_59] : memref<1x1x32xf32, #tpu.memory_space<vmem>>, vector<1x1x32xf32>
    %130 = vector.shape_cast %129 : vector<1x1x32xf32> to vector<1x32xf32>
    %c0_60 = arith.constant 0 : index
    %c0_61 = arith.constant 0 : index
    %c0_62 = arith.constant 0 : index
    %131 = vector.load %arg16[%c0_60, %c0_61, %c0_62] : memref<1x1x32xf32, #tpu.memory_space<vmem>>, vector<1x1x32xf32>
    %132 = vector.shape_cast %131 : vector<1x1x32xf32> to vector<1x32xf32>
    %cst_63 = arith.constant dense<0.000000e+00> : vector<16xf32>
    %133 = vector.multi_reduction <add>, %128, %cst_63 [1] : vector<16x32xf32> to vector<16xf32>
    %134 = vector.shape_cast %133 : vector<16xf32> to vector<16x1xf32>
    %cst_64 = arith.constant 3.200000e+01 : f32
    %135 = vector.broadcast %cst_64 : f32 to vector<16x1xf32>
    %136 = arith.divf %134, %135 : vector<16x1xf32>
    %137 = vector.broadcast %136 : vector<16x1xf32> to vector<16x32xf32>
    %138 = arith.subf %128, %137 : vector<16x32xf32>
    %139 = arith.mulf %138, %138 : vector<16x32xf32>
    %cst_65 = arith.constant dense<0.000000e+00> : vector<16xf32>
    %140 = vector.multi_reduction <add>, %139, %cst_65 [1] : vector<16x32xf32> to vector<16xf32>
    %141 = vector.shape_cast %140 : vector<16xf32> to vector<16x1xf32>
    %cst_66 = arith.constant 3.200000e+01 : f32
    %142 = vector.broadcast %cst_66 : f32 to vector<16x1xf32>
    %143 = arith.divf %141, %142 : vector<16x1xf32>
    %144 = vector.broadcast %136 : vector<16x1xf32> to vector<16x32xf32>
    %145 = arith.subf %128, %144 : vector<16x32xf32>
    %cst_67 = arith.constant 9.99999996E-13 : f32
    %146 = vector.broadcast %cst_67 : f32 to vector<16x1xf32>
    %147 = arith.addf %143, %146 : vector<16x1xf32>
    %148 = math.rsqrt %147 : vector<16x1xf32>
    %149 = vector.broadcast %148 : vector<16x1xf32> to vector<16x32xf32>
    %150 = arith.mulf %145, %149 : vector<16x32xf32>
    %151 = vector.broadcast %130 : vector<1x32xf32> to vector<16x32xf32>
    %152 = arith.mulf %150, %151 : vector<16x32xf32>
    %153 = vector.broadcast %132 : vector<1x32xf32> to vector<16x32xf32>
    %154 = arith.addf %152, %153 : vector<16x32xf32>
    %155 = arith.truncf %154 : vector<16x32xf32> to vector<16x32xbf16>
    %c0_68 = arith.constant 0 : index
    %c0_69 = arith.constant 0 : index
    %156 = vector.load %arg22[%c0_68, %c0_69] : memref<16x32xbf16, #tpu.memory_space<vmem>>, vector<16x32xbf16>
    tpu.vector_store %arg22[%c0_68, %c0_69], %155 {strides = array<i32>} : memref<16x32xbf16, #tpu.memory_space<vmem>>, vector<16x32xbf16>,
    %c1_i32 = arith.constant 1 : i32
    %157 = arith.cmpi eq, %arg0, %c1_i32 : i32
    %158 = arith.extui %157 : i1 to i32
    %c0_i32_70 = arith.constant 0 : i32
    %159 = arith.cmpi ne, %158, %c0_i32_70 : i32
    scf.if %159 {
      %160 = vector.shape_cast %154 : vector<16x32xf32> to vector<2x8x32xf32>
      %161 = vector.extract_strided_slice %160 {offsets = [0, 0, 0], sizes = [2, 1, 32], strides = [1, 1, 1]} : vector<2x8x32xf32> to vector<2x1x32xf32>
      %162 = vector.shape_cast %161 : vector<2x1x32xf32> to vector<2x32xf32>
      %163 = arith.truncf %162 : vector<2x32xf32> to vector<2x32xbf16>
      %c0_71 = arith.constant 0 : index
      %c0_72 = arith.constant 0 : index
      %164 = vector.load %arg17[%c0_71, %c0_72] : memref<32x32xbf16, #tpu.memory_space<vmem>>, vector<32x32xbf16>
      %cst_73 = arith.constant dense<0.000000e+00> : vector<2x32xf32>
      %165 = tpu.matmul %163, %164, %cst_73 {dimension_numbers = #tpu.dot_dimension_numbers<[1], [0], [0], [1], [0, 0, 1, 1], [], []>} : vector<2x32xbf16>, vector<32x32xbf16>, vector<2x32xf32> -> vector<2x32xf32>
      %c0_74 = arith.constant 0 : index
      %c0_75 = arith.constant 0 : index
      %166 = vector.load %arg18[%c0_74, %c0_75] : memref<1x32xf32, #tpu.memory_space<vmem>>, vector<1x32xf32>
      %167 = vector.broadcast %166 : vector<1x32xf32> to vector<2x32xf32>
      %168 = arith.addf %165, %167 : vector<2x32xf32>
      %169 = math.tanh %168 : vector<2x32xf32>
      %170 = arith.truncf %169 : vector<2x32xf32> to vector<2x32xbf16>
      %c0_76 = arith.constant 0 : index
      %c0_77 = arith.constant 0 : index
      %171 = vector.load %arg19[%c0_76, %c0_77] : memref<32x128xbf16, #tpu.memory_space<vmem>>, vector<32x128xbf16>
      %cst_78 = arith.constant dense<0.000000e+00> : vector<2x128xf32>
      %172 = tpu.matmul %170, %171, %cst_78 {dimension_numbers = #tpu.dot_dimension_numbers<[1], [0], [0], [1], [0, 0, 1, 1], [], []>} : vector<2x32xbf16>, vector<32x128xbf16>, vector<2x128xf32> -> vector<2x128xf32>
      %c0_79 = arith.constant 0 : index
      %c0_80 = arith.constant 0 : index
      %173 = vector.load %arg20[%c0_79, %c0_80] : memref<1x128xf32, #tpu.memory_space<vmem>>, vector<1x128xf32>
      %174 = vector.broadcast %173 : vector<1x128xf32> to vector<2x128xf32>
      %175 = arith.addf %172, %174 : vector<2x128xf32>
      %c0_81 = arith.constant 0 : index
      %c0_82 = arith.constant 0 : index
      %176 = vector.load %arg21[%c0_81, %c0_82] : memref<2x128xf32, #tpu.memory_space<vmem>>, vector<2x128xf32>
      tpu.vector_store %arg21[%c0_81, %c0_82], %175 {strides = array<i32>} : memref<2x128xf32, #tpu.memory_space<vmem>>, vector<2x128xf32>,
    } else {
    }
    return
  }
  func.func @transform_0(%arg0: i32, %arg1: memref<2xi32, #tpu.memory_space<smem>>) -> (i32, i32) {
    %c0_i32 = arith.constant 0 : i32
    %c0_i32_0 = arith.constant 0 : i32
    %c0_i32_1 = arith.constant 0 : i32
    return %c0_i32, %c0_i32_0 : i32, i32
  }
  func.func @transform_1(%arg0: i32, %arg1: memref<2xi32, #tpu.memory_space<smem>>) -> (i32, i32) {
    %c0_i32 = arith.constant 0 : i32
    %c0_i32_0 = arith.constant 0 : i32
    %c0_i32_1 = arith.constant 0 : i32
    return %c0_i32, %c0_i32_0 : i32, i32
  }
  func.func @transform_2(%arg0: i32, %arg1: memref<2xi32, #tpu.memory_space<smem>>) -> (i32, i32) {
    %c0_i32 = arith.constant 0 : i32
    %c0_i32_0 = arith.constant 0 : i32
    %c0_i32_1 = arith.constant 0 : i32
    return %c0_i32, %c0_i32_0 : i32, i32
  }
  func.func @transform_3(%arg0: i32, %arg1: memref<2xi32, #tpu.memory_space<smem>>) -> (i32, i32, i32) {
    %c0_i32 = arith.constant 0 : i32
    %c0_i32_0 = arith.constant 0 : i32
    %c0_i32_1 = arith.constant 0 : i32
    return %arg0, %c0_i32, %c0_i32_0 : i32, i32, i32
  }
  func.func @transform_4(%arg0: i32, %arg1: memref<2xi32, #tpu.memory_space<smem>>) -> (i32, i32, i32) {
    %c0_i32 = arith.constant 0 : i32
    %c0_i32_0 = arith.constant 0 : i32
    %c0_i32_1 = arith.constant 0 : i32
    return %arg0, %c0_i32, %c0_i32_0 : i32, i32, i32
  }
  func.func @transform_5(%arg0: i32, %arg1: memref<2xi32, #tpu.memory_space<smem>>) -> (i32, i32, i32) {
    %c0_i32 = arith.constant 0 : i32
    %c0_i32_0 = arith.constant 0 : i32
    %c0_i32_1 = arith.constant 0 : i32
    return %arg0, %c0_i32, %c0_i32_0 : i32, i32, i32
  }
  func.func @transform_6(%arg0: i32, %arg1: memref<2xi32, #tpu.memory_space<smem>>) -> (i32, i32, i32) {
    %c0_i32 = arith.constant 0 : i32
    %c0_i32_0 = arith.constant 0 : i32
    %c0_i32_1 = arith.constant 0 : i32
    return %arg0, %c0_i32, %c0_i32_0 : i32, i32, i32
  }
  func.func @transform_7(%arg0: i32, %arg1: memref<2xi32, #tpu.memory_space<smem>>) -> (i32, i32, i32) {
    %c0_i32 = arith.constant 0 : i32
    %c0_i32_0 = arith.constant 0 : i32
    %c0_i32_1 = arith.constant 0 : i32
    return %arg0, %c0_i32, %c0_i32_0 : i32, i32, i32
  }
  func.func @transform_8(%arg0: i32, %arg1: memref<2xi32, #tpu.memory_space<smem>>) -> (i32, i32, i32) {
    %c0_i32 = arith.constant 0 : i32
    %c0_i32_0 = arith.constant 0 : i32
    %c0_i32_1 = arith.constant 0 : i32
    return %arg0, %c0_i32, %c0_i32_0 : i32, i32, i32
  }
  func.func @transform_9(%arg0: i32, %arg1: memref<2xi32, #tpu.memory_space<smem>>) -> (i32, i32, i32) {
    %c0_i32 = arith.constant 0 : i32
    %c0_i32_0 = arith.constant 0 : i32
    %c0_i32_1 = arith.constant 0 : i32
    return %arg0, %c0_i32, %c0_i32_0 : i32, i32, i32
  }
  func.func @transform_10(%arg0: i32, %arg1: memref<2xi32, #tpu.memory_space<smem>>) -> (i32, i32, i32) {
    %c0_i32 = arith.constant 0 : i32
    %c0_i32_0 = arith.constant 0 : i32
    %c0_i32_1 = arith.constant 0 : i32
    return %arg0, %c0_i32, %c0_i32_0 : i32, i32, i32
  }
  func.func @transform_11(%arg0: i32, %arg1: memref<2xi32, #tpu.memory_space<smem>>) -> (i32, i32, i32) {
    %c0_i32 = arith.constant 0 : i32
    %c0_i32_0 = arith.constant 0 : i32
    %c0_i32_1 = arith.constant 0 : i32
    return %arg0, %c0_i32, %c0_i32_0 : i32, i32, i32
  }
  func.func @transform_12(%arg0: i32, %arg1: memref<2xi32, #tpu.memory_space<smem>>) -> (i32, i32, i32) {
    %c0_i32 = arith.constant 0 : i32
    %c0_i32_0 = arith.constant 0 : i32
    %c0_i32_1 = arith.constant 0 : i32
    return %arg0, %c0_i32, %c0_i32_0 : i32, i32, i32
  }
  func.func @transform_13(%arg0: i32, %arg1: memref<2xi32, #tpu.memory_space<smem>>) -> (i32, i32, i32) {
    %c0_i32 = arith.constant 0 : i32
    %c0_i32_0 = arith.constant 0 : i32
    %c0_i32_1 = arith.constant 0 : i32
    return %arg0, %c0_i32, %c0_i32_0 : i32, i32, i32
  }
  func.func @transform_14(%arg0: i32, %arg1: memref<2xi32, #tpu.memory_space<smem>>) -> (i32, i32, i32) {
    %c0_i32 = arith.constant 0 : i32
    %c0_i32_0 = arith.constant 0 : i32
    %c0_i32_1 = arith.constant 0 : i32
    return %arg0, %c0_i32, %c0_i32_0 : i32, i32, i32
  }
  func.func @transform_15(%arg0: i32, %arg1: memref<2xi32, #tpu.memory_space<smem>>) -> (i32, i32) {
    %c0_i32 = arith.constant 0 : i32
    %c0_i32_0 = arith.constant 0 : i32
    %c0_i32_1 = arith.constant 0 : i32
    return %c0_i32, %c0_i32_0 : i32, i32
  }
  func.func @transform_16(%arg0: i32, %arg1: memref<2xi32, #tpu.memory_space<smem>>) -> (i32, i32) {
    %c0_i32 = arith.constant 0 : i32
    %c0_i32_0 = arith.constant 0 : i32
    %c0_i32_1 = arith.constant 0 : i32
    return %c0_i32, %c0_i32_0 : i32, i32
  }
  func.func @transform_17(%arg0: i32, %arg1: memref<2xi32, #tpu.memory_space<smem>>) -> (i32, i32) {
    %c0_i32 = arith.constant 0 : i32
    %c0_i32_0 = arith.constant 0 : i32
    %c0_i32_1 = arith.constant 0 : i32
    return %c0_i32, %c0_i32_0 : i32, i32
  }
  func.func @transform_18(%arg0: i32, %arg1: memref<2xi32, #tpu.memory_space<smem>>) -> (i32, i32) {
    %c0_i32 = arith.constant 0 : i32
    %c0_i32_0 = arith.constant 0 : i32
    %c0_i32_1 = arith.constant 0 : i32
    return %c0_i32, %c0_i32_0 : i32, i32
  }
  func.func @transform_19(%arg0: i32, %arg1: memref<2xi32, #tpu.memory_space<smem>>) -> (i32, i32) {
    %c0_i32 = arith.constant 0 : i32
    %c0_i32_0 = arith.constant 0 : i32
    %c0_i32_1 = arith.constant 0 : i32
    return %c0_i32, %c0_i32_0 : i32, i32
  }
}

</mosaic_0001>

<bundles_post_ra>
// kernel: bert_classifier_forward.1
= control target key start
LH: loop header
LB: loop body
LE: loop exit
PB: predicated region body
PF: predicated region fallthrough
CT: control target
= control target key end

     0   :  { %s1925_s24 = smov [#allocation5]   ;;  %s2259_s0 = inlined_call_operand.vmem [shape: s32[2], index: 0, kind: input, shape index: {}]   ;;  %s2260_s1 = inlined_call_operand.vmem [shape: f32[16,32], index: 1, kind: input, shape index: {}]   ;;  %s2261_s2 = inlined_call_operand.vmem [shape: f32[1,32], index: 2, kind: input, shape index: {}]   ;;  %s2262_s3 = inlined_call_operand.vmem [shape: f32[1,32], index: 3, kind: input, shape index: {}]   ;;  %s2263_s4 = inlined_call_operand.vmem [shape: bf16[2,32,96], index: 4, kind: input, shape index: {}]   ;;  %s2264_s5 = inlined_call_operand.vmem [shape: f32[2,1,96], index: 5, kind: input, shape index: {}]   ;;  %s2265_s6 = inlined_call_operand.vmem [shape: bf16[2,32,32], index: 6, kind: input, shape index: {}]   ;;  %s2266_s7 = inlined_call_operand.vmem [shape: f32[2,1,32], index: 7, kind: input, shape index: {}]   ;;  %s2267_s8 = inlined_call_operand.vmem [shape: f32[2,1,32], index: 8, kind: input, shape index: {}]   ;;  %s2268_s9 = inlined_call_operand.vmem [shape: f32[2,1,32], index: 9, kind: input, shape index: {}]   ;;  %s2269_s10 = inlined_call_operand.vmem [shape: bf16[2,32,64], index: 10, kind: input, shape index: {}]   ;;  %s2270_s11 = inlined_call_operand.vmem [shape: f32[2,1,64], index: 11, kind: input, shape index: {}]   ;;  %s2271_s12 = inlined_call_operand.vmem [shape: bf16[2,64,32], index: 12, kind: input, shape index: {}]   ;;  %s2272_s13 = inlined_call_operand.vmem [shape: f32[2,1,32], index: 13, kind: input, shape index: {}]   ;;  %s2273_s14 = inlined_call_operand.vmem [shape: f32[2,1,32], index: 14, kind: input, shape index: {}]   ;;  %s2274_s15 = inlined_call_operand.vmem [shape: f32[2,1,32], index: 15, kind: input, shape index: {}]   ;;  %s2275_s16 = inlined_call_operand.vmem [shape: bf16[32,32], index: 16, kind: input, shape index: {}]   ;;  %s2276_s17 = inlined_call_operand.vmem [shape: f32[1,32], index: 17, kind: input, shape index: {}]   ;;  %s2277_s18 = inlined_call_operand.vmem [shape: bf16[32,128], index: 18, kind: input, shape index: {}]   ;;  %s2278_s19 = inlined_call_operand.vmem [shape: f32[1,128], index: 19, kind: input, shape index: {}]   ;;  %s2279_s20 = inlined_call_operand.hbm [shape: f32[2,128], index: 20, kind: output, shape index: {}]  }
   0x1   :  { %2283 = sst [smem:[#allocation11_spill]] %s2259_s0 }
   0x2   :  { %2284 = sst [smem:[#allocation12_spill]] %s2260_s1 }
   0x3   :  { %2285 = sst [smem:[#allocation13_spill]] %s2261_s2 }
   0x4   :  { %2286 = sst [smem:[#allocation14_spill]] %s2262_s3 }
   0x5   :  { %2287 = sst [smem:[#allocation15_spill]] %s2263_s4 }
   0x6   :  { %2288 = sst [smem:[#allocation16_spill]] %s2265_s6 }
   0x7   :  { %2289 = sst [smem:[#allocation17_spill]] %s2269_s10 }
   0x8   :  { %2290 = sst [smem:[#allocation18_spill]] %s2273_s14 }
   0x9   :  { %2291 = sst [smem:[#allocation19_spill]] %s2276_s17 }
   0xa   :  { %2292 = sst [smem:[#allocation20_spill]] %s2277_s18 }
   0xb   :  { %2293 = sst [smem:[#allocation21_spill]] %s2278_s19 }
   0xc   :  { %2294 = sst [smem:[#allocation22_spill]] %s2279_s20 }
   0xd   :  { %s2295_s23 = sld [smem:[#allocation11_spill]] }
  0x13   :  { %s26_s14 = sshll.u32 %s2295_s23, 4  ;;  %s27_s14 = int_to_ptr.vmem [resolvable:$true] %s26_s14 }
  0x14   :  { %29 = dma.vmem_to_smem %s27_s14, 16, %s1925_s24, [#allocation4] }
  0x15   :  { %1915 = dma.done.wait [#allocation4], 16 }
  0x16   :  { %1916 = vsyncadd [#allocation4], 4294967280 }
  0x17   :  { %32 = sfence }
  0x18   :  { %33 = vsyncpa [#allocation7], 0  ;;  %s2043_s2 = smov 0  }
  0x19 LB: > { %2296 = sst [smem:[#allocation10_spill]] %s1923_s2  ;;  %s2049_s25 = sadd.s32 4294967295, %s1923_s2   ;;  %s1923_s2 = sphi %s2043_s2, %s39_s2  }
  0x1a   : > { %p1687_p0 = scmp.ge.s32.totalorder %s1923_s2, 1  ;;  %p636_p1 = scmp.lt.s32.totalorder %s1923_s2, 3 }
  0x1c   : > { %p637_p2 = pnand %p1687_p0, %p636_p1 }
  0x1d   : > { %p726_p3 = scmp.lt.s32.totalorder (!%p637_p2), %s2049_s25, 1  ;;  %s2297_s30 = sld [smem:[#allocation15_spill]] (!%p637_p2) }
  0x1e   : > { %640 = sbr.rel (%p637_p2) target bundleno = 2425 (0x979), region = 96  ;;  %s2298_s6 = sld [smem:[#allocation16_spill]] (!%p637_p2) }
  0x1f   : > { %s2299_s10 = sld [smem:[#allocation17_spill]] (!%p637_p2)  ;;  %p1696_p4 = scmp.ne.s32.totalorder (!%p637_p2), %s2049_s25, 0 }
  0x20   : > { %s2300_s17 = sld [smem:[#allocation18_spill]] (!%p637_p2) }
  0x23   : > { %s2055_s14 = scalar_select %p726_p3, %s2049_s25, 1 }
  0x24   : > { %s2301_s23 = sld [smem:[#allocation12_spill]] (!%p1696_p4) }
  0x25   : > { %s1778_s3 = sshll.u32 %s2055_s14, 4  ;;  %s1781_s18 = sshll.u32 %s2055_s14, 5 }
  0x26   : > { %s2065_s0 = scalar_lea.vmem %s2297_s30, %s1778_s3  ;;  %s2070_s22 = scalar_lea.vmem %s2298_s6, %s1778_s3 }
  0x27   : > { %s2087_s30 = scalar_lea.vmem %s2299_s10, %s1778_s3  ;;  %s755_s6 = scalar_lea.vmem %s2270_s11, %s2055_s14 }
  0x28   : > { %s2097_s2 = scalar_lea.vmem %s2271_s12, %s1781_s18  ;;  %s763_s26 = scalar_lea.vmem %s2272_s13, %s2055_s14 }
  0x29   : > { %s766_s4 = scalar_lea.vmem %s2300_s17, %s2055_s14  ;;  %s769_s10 = scalar_lea.vmem %s2274_s15, %s2055_s14 }
  0x2a   : > { %774 = sbr.rel (%p1696_p4) target bundleno = 327 (0x147), region = 100  ;;  %s848_s17 = sld [smem:[#allocation5]] (!%p1696_p4) }
  0x2b   : > { %s1697_s28 = sld [smem:[#allocation5 + $0x1]] (!%p1696_p4) }
  0x2c   : > { %s2302_s27 = sld [smem:[#allocation13_spill]] (!%p1696_p4) }
  0x2d   : > { %s2303_s21 = sld [smem:[#allocation14_spill]] (!%p1696_p4) }
  0x2f   : > { %v775_v0 = vld [vmem:[%s2301_s23] sm:$0xff]  ;;  %vm779_vm0 = vcmask 261120   ;;  %v776_v2 = vld [vmem:[%s2301_s23 + $0x8] sm:$0xff]  ;;  %v1926_v4 = vmov 32.0   ;;  %v846_v23 = vlaneseq  ;;  %v1927_v28 = vmov -1e+09  }
  0x30   : > { %v780_v1 = vsel %vm779_vm0, %v775_v0, 0.0  ;;  %v783_v3 = vsel %vm779_vm0, %v776_v2, 0.0  ;;  %1823 = vrcp.f32 %v1926_v4  ;;  %v849_v26 = vstv %s848_s17 }
  0x31   : > { %781 = vadd.xlane.f32.xlu0 %v780_v1  ;;  %v847_v25 = vand.u32 127, %v846_v23  ;;  %v855_v27 = vstv %s1697_s28  ;;  %vm852_vm3 = vcmask 57344   ;;  %vm843_vm9 = vcmask 257024  }
  0x32   : > { %v1821_v42 = vld [vmem:[%s2302_s27] ss:$0 sm:$0xff] }
  0x33   : > { %vm850_vm2 = vcmp.lt.s32.totalorder %v847_v25, %v849_v26  ;;  %vm856_vm4 = vcmp.lt.s32.totalorder %v847_v25, %v855_v27  ;;  %v1822_v45 = vld [vmem:[%s2303_s21] ss:$0 sm:$0xff] }
  0x34   : > { %v851_v29 = vsel %vm850_vm2, 0.0, %v1927_v28  ;;  %v857_v30 = vsel %vm856_vm4, 0.0, %v1927_v28 }
  0x35   : > { %853 = vst.msk [vmem:[#allocation3] sm:$0x1] %vm852_vm3, %v851_v29 }
  0x36   : > { %v1824_v5 = vpop.eup %1823  ;;  %858 = vst.msk [vmem:[#allocation3 + $0x1] sm:$0x1] %vm852_vm3, %v857_v30 }
  0x37   : > { %v787_v6 = vmul.f32 32.0, %v1824_v5  ;;  %vm791_vm1 = vweird.f32 %v1824_v5 }
  0x39   : > { %784 = vadd.xlane.f32.xlu0 %v783_v3  ;;  %v788_v7 = vsub.f32 1.0, %v787_v6 }
  0x3b   : > { %v789_v8 = vmul.f32 %v1824_v5, %v788_v7 }
  0x3d   : > { %v790_v9 = vadd.f32 %v1824_v5, %v789_v8 }
  0x3f   : > { %v792_v10 = vsel %vm791_vm1, %v1824_v5, %v790_v9 }
  0xa4   : > { %v782_v11 = vpop.xlane.xlu0 %781 }
  0xa5   : > { %v793_v12 = vmul.f32 %v792_v10, %v782_v11 }
  0xa7   : > { %v795_v13 = vsub.f32 %v775_v0, %v793_v12 }
  0xa9   : > { %v797_v14 = vmul.f32 %v795_v13, %v795_v13 }
  0xab   : > { %v799_v15 = vsel %vm779_vm0, %v797_v14, 0.0 }
  0xac   : > { %800 = vadd.xlane.f32.xlu1 %v799_v15  ;;  %v785_v16 = vpop.xlane.xlu0 %784 }
  0xad   : > { %v794_v17 = vmul.f32 %v792_v10, %v785_v16 }
  0xaf   : > { %v796_v18 = vsub.f32 %v776_v2, %v794_v17 }
  0xb1   : > { %v798_v19 = vmul.f32 %v796_v18, %v796_v18 }
  0xb3   : > { %v802_v20 = vsel %vm779_vm0, %v798_v19, 0.0 }
  0xb4   : > { %803 = vadd.xlane.f32.xlu1 %v802_v20 }
 0x11f   : > { %v801_v21 = vpop.xlane.xlu1 %800 }
 0x120   : > { %v805_v22 = vmul.f32 %v801_v21, %v792_v10 }
 0x122   : > { %v807_v24 = vadd.f32 1e-12, %v805_v22 }
 0x124   : > { %1825 = vrsqrt.f32 %v807_v24  ;;  %vm815_vm6 = vweird.f32 %v807_v24 }
 0x127   : > { %v804_v31 = vpop.xlane.xlu1 %803 }
 0x128   : > { %v806_v32 = vmul.f32 %v804_v31, %v792_v10 }
 0x12a   : > { %v1826_v33 = vpop.eup %1825  ;;  %v808_v34 = vadd.f32 1e-12, %v806_v32 }
 0x12b   : > { %v810_v35 = vmul.f32 %v1826_v33, %v807_v24  ;;  %vm816_vm5 = vweird.f32 %v1826_v33 }
 0x12c   : > { %1827 = vrsqrt.f32 %v808_v34  ;;  %vm817_vm7 = vmor %vm815_vm6, %vm816_vm5  ;;  %vm825_vm10 = vweird.f32 %v808_v34 }
 0x12d   : > { %v811_v36 = vmul.f32 %v1826_v33, %v810_v35 }
 0x12f   : > { %v812_v37 = vmul.f32 0.5, %v811_v36 }
 0x131   : > { %v813_v38 = vsub.f32 1.5, %v812_v37 }
 0x132   : > { %v1828_v39 = vpop.eup %1827 }
 0x133   : > { %v814_v40 = vmul.f32 %v1826_v33, %v813_v38  ;;  %v820_v41 = vmul.f32 %v1828_v39, %v808_v34  ;;  %vm826_vm8 = vweird.f32 %v1828_v39 }
 0x134   : > { %vm827_vm11 = vmor %vm825_vm10, %vm826_vm8 }
 0x135   : > { %v818_v43 = vsel %vm817_vm7, %v1826_v33, %v814_v40  ;;  %v821_v44 = vmul.f32 %v1828_v39, %v820_v41 }
 0x136   : > { %v829_v46 = vmul.f32 %v818_v43, %v795_v13 }
 0x137   : > { %v822_v47 = vmul.f32 0.5, %v821_v44 }
 0x138   : > { %v834_v48 = vmul.f32 %v1821_v42, %v829_v46 }
 0x139   : > { %v823_v49 = vsub.f32 1.5, %v822_v47 }
 0x13a   : > { %v839_v50 = vadd.f32 %v1822_v45, %v834_v48 }
 0x13b   : > { %v824_v51 = vmul.f32 %v1828_v39, %v823_v49 }
 0x13c   : > { %v841_v52 = vpack.c.bf16 %v839_v50, %v839_v50 }
 0x13d   : > { %v828_v53 = vsel %vm827_vm11, %v1828_v39, %v824_v51 }
 0x13e   : > { %844 = vst.msk [vmem:[#allocation2] sm:$0xf] %vm843_vm9, %v841_v52  ;;  %v830_v54 = vmul.f32 %v828_v53, %v796_v18 }
 0x140   : > { %v835_v55 = vmul.f32 %v1821_v42, %v830_v54 }
 0x142   : > { %v840_v56 = vadd.f32 %v1822_v45, %v835_v55 }
 0x144   : > { %v842_v57 = vpack.c.bf16 %v840_v56, %v840_v56 }
 0x146   : > { %845 = vst.msk [vmem:[#allocation2 + $0x4] sm:$0xf] %vm843_vm9, %v842_v57 }
 0x147 PF: > { %v1784_v58 = vld [vmem:[%s2065_s0 + $0x8] sm:$0xff]  ;;  %v1783_v59 = vld [vmem:[%s2065_s0] sm:$0xff]  ;;  %vm889_vm12 = vcmask 261120   ;;  %s2304_s24 = scalar_lea.vmem %s2264_s5, %s2055_s14  ;;  %s1928_s17 = smov 112   ;;  %vm918_vm13 = vcmask 130048   ;;  %vm962_vm14 = vcmask 64512  }
 0x148   : > { %899 = vmatpush.bf16.msra.mxu0 %v1784_v58  ;;  %v1829_v61 = vld [vmem:[%s2304_s24] ss:$0 sm:$0xff]  ;;  %s1929_s0 = smov 80   ;;  %s1930_s28 = smov 96   ;;  %v861_v18 = vld [vmem:[#allocation3] sm:$0x3] }
 0x149   : > { %v909_v19 = vperm.slane %v861_v18, 0  ;;  %v863_v27 = vrot.slane %v861_v18, 1  ;;  %s1931_s19 = smov 64   ;;  %s1932_s20 = smov 48   ;;  %vm992_vm15 = vcmask 1043456   ;;  %v1785_v18 = vld [vmem:[%s2070_s22] sm:$0xff] }
 0x14a   : > { %s2305_s3 = scalar_lea.vmem %s2266_s7, %s2055_s14  ;;  %s2306_s21 = scalar_lea.vmem %s2267_s8, %s2055_s14  ;;  %vm1360_vm7 = vcmask 523264  }
 0x14b   : > { %v910_v29 = vperm.slane %v863_v27, 0  ;;  %s2307_s24 = scalar_lea.vmem %s2268_s9, %s2055_s14  ;;  %p1755_p5 = scmp.ne.s32.totalorder %s2049_s25, 1 }
 0x14c   : > { %900 = vmatpush.bf16.msra.mxu0 %v1783_v59  ;;  %s2309_s29 = sld [smem:[#allocation20_spill]] (!%p1755_p5) }
 0x14d   : > { %v1782_v60 = vld [vmem:[#allocation2] sm:$0xff] }
 0x14f   : > { %1710 = vmatmul.msk.bf16.vlgmr.msra.gmra.mxu0 %vm889_vm12, %v1782_v60 }
 0x1cc   : > { %v902_v62 = vpop.f32.mrf.mxu0 }
 0x1cd   : > { %v903_v63 = vadd.f32 %v1829_v61, %v902_v62 }
 0x1cf   : > { %v907_v0 = vpack.c.bf16 %v903_v63, %v903_v63 }
 0x1d1   : > { %v914_v1 = vunpack.c.l.b16 %v907_v0 }
 0x1d3   : > { %v915_v2 = vpack.c.b16 %v914_v1, %v914_v1 }
 0x1d4   : > { %v904_v3 = vpop.f32.mrf.mxu0 }
 0x1d5   : > { %v905_v4 = vadd.f32 %v1829_v61, %v904_v3  ;;  %1033 = vrot.lane.b32.xlu2 %v915_v2, %s1928_s17  ;;  %1035 = vrot.lane.b32.xlu1 %v915_v2, %s1929_s0 }
 0x1d6   : > { %916 = vrot.lane.b32.xlu0 %v915_v2, %s1930_s28 }
 0x1d7   : > { %v908_v5 = vpack.c.bf16 %v905_v4, %v905_v4 }
 0x1d9   : > { %v939_v6 = vunpack.c.l.b16 %v908_v5 }
 0x1db   : > { %v2136_v7 = vpack.c.b16 %v939_v6, %v939_v6 }
 0x1dd   : > { %1056 = vrot.lane.b32.xlu2 %v2136_v7, %s1928_s17  ;;  %1058 = vrot.lane.b32.xlu1 %v2136_v7, %s1929_s0  ;;  %s2310_s17 = sld [smem:[#allocation19_spill]] (!%p1755_p5) }
 0x1de   : > { %941 = vrot.lane.b32.xlu0 %v2136_v7, %s1930_s28 }
 0x22f   : > { %v1034_v12 = vpop.permute.xlu2 %1033 }
 0x237   : > { %v1057_v17 = vpop.permute.xlu2 %1056 }
 0x247   : > { %v1036_v8 = vpop.permute.xlu1 %1035 }
 0x248   : > { %v917_v9 = vpop.permute.xlu0 %916  ;;  %v1041_v10 = vsel %vm918_vm13, %v1036_v8, 0 }
 0x249   : > { %v923_v11 = vsel %vm918_vm13, %v917_v9, 0  ;;  %1050 = vmatpush.bf16.xpose.msrb.mxu0 %v1041_v10 }
 0x24a   : > { %932 = vmatpush.bf16.xpose.msra.mxu1 %v923_v11 }
 0x24f   : > { %v1059_v13 = vpop.permute.xlu1 %1058 }
 0x250   : > { %v942_v14 = vpop.permute.xlu0 %941  ;;  %1715 = vmatmul.msk.bf16.vlgmr.msrb.gmra.mxu0 %vm918_vm13, %v1034_v12  ;;  %v1064_v15 = vsel %vm918_vm13, %v1059_v13, 0 }
 0x251   : > { %1711 = vmatmul.msk.bf16.vlgmr.msra.gmra.mxu1 %vm918_vm13, %v907_v0  ;;  %v947_v16 = vsel %vm918_vm13, %v942_v14, 0 }
 0x252   : > { %956 = vmatpush.bf16.xpose.msra.mxu2 %v947_v16  ;;  %1073 = vmatpush.bf16.xpose.msrb.mxu1 %v1064_v15 }
 0x259   : > { %1712 = vmatmul.msk.bf16.vlgmr.msra.gmra.mxu2 %vm918_vm13, %v908_v5 }
 0x25a   : > { %1187 = vmatpush.bf16.msra.mxu1 %v1785_v18 }
 0x261   : > { %1716 = vmatmul.msk.bf16.vlgmr.msrb.gmra.mxu1 %vm918_vm13, %v1057_v17 }
 0x2cd   : > { %v1052_v20 = vpop.f32.mrf.mxu0 }
 0x2ce   : > { %v934_v21 = vpop.f32.mrf.mxu1  ;;  %v1053_v22 = vadd.f32 %v1052_v20, %v909_v19 }
 0x2cf   : > { %v935_v23 = vadd.f32 %v934_v21, %v909_v19  ;;  %v1786_v19 = vld [vmem:[%s2070_s22 + $0x8] sm:$0xff] }
 0x2d0   : > { %v1079_v24 = vsel %vm962_vm14, %v1053_v22, -inf  ;;  %1164 = vmatpush.bf16.msra.mxu0 %v1786_v19  ;;  %v1831_v19 = vld [vmem:[%s2306_s21] ss:$0 sm:$0xff] }
 0x2d1   : > { %1080 = vmax.xlane.f32.xlu2 %v1079_v24  ;;  %v963_v25 = vsel %vm962_vm14, %v935_v23, -inf }
 0x2d2   : > { %964 = vmax.xlane.f32.xlu0 %v963_v25 }
 0x2d5   : > { %v1054_v26 = vpop.f32.mrf.mxu0 }
 0x2d6   : > { %v936_v28 = vpop.f32.mrf.mxu1 }
 0x2dc   : > { %v958_v30 = vpop.f32.mrf.mxu2 }
 0x2dd   : > { %v959_v31 = vadd.f32 %v958_v30, %v910_v29 }
 0x2de   : > { %v1075_v32 = vpop.f32.mrf.mxu1 }
 0x2df   : > { %v1076_v33 = vadd.f32 %v1075_v32, %v910_v29  ;;  %v966_v34 = vsel %vm962_vm14, %v959_v31, -inf  ;;  %v1830_v32 = vld [vmem:[%s2305_s3] ss:$0 sm:$0xff] }
 0x2e0   : > { %967 = vmax.xlane.f32.xlu1 %v966_v34 }
 0x2e1   : > { %v1082_v35 = vsel %vm962_vm14, %v1076_v33, -inf }
 0x2e2   : > { %1083 = vmax.xlane.f32.xlu2 %v1082_v35 }
 0x2e4   : > { %v960_v36 = vpop.f32.mrf.mxu2 }
 0x2e6   : > { %v1077_v37 = vpop.f32.mrf.mxu1  ;;  %1009 = vrot.lane.b32.xlu0 %v2136_v7, %s1931_s19 }
 0x2f9   : > { %987 = vrot.lane.b32.xlu1 %v915_v2, %s1931_s19 }
 0x301   : > { %1103 = vrot.lane.b32.xlu1 %v915_v2, %s1932_s20 }
 0x344   : > { %v1081_v43 = vpop.xlane.xlu2 %1080 }
 0x345   : > { %v965_v38 = vpop.xlane.xlu0 %964  ;;  %v1085_v46 = vsub.f32 %v1053_v22, %v1081_v43 }
 0x346   : > { %v969_v39 = vsub.f32 %v935_v23, %v965_v38 }
 0x347   : > { %v1087_v48 = vmul.f32 1.442695, %v1085_v46  ;;  %v1933_v46 = vmov 32.0  }
 0x348   : > { %v971_v40 = vmul.f32 1.442695, %v969_v39 }
 0x34a   : > { %1837 = vpow2.f32 %v971_v40 }
 0x350   : > { %v1838_v41 = vpop.eup %1837 }
 0x351   : > { %v975_v42 = vsel %vm962_vm14, %v1838_v41, 0.0 }
 0x352   : > { %976 = vadd.xlane.f32.xlu0 %v975_v42 }
 0x353   : > { %v968_v44 = vpop.xlane.xlu1 %967 }
 0x354   : > { %v970_v45 = vsub.f32 %v959_v31, %v968_v44  ;;  %v859_v31 = vld [vmem:[#allocation2] sm:$0xff]  }
 0x355   : > { %v1084_v49 = vpop.xlane.xlu2 %1083  ;;  %v1200_v35 = vunpack.c.l.bf16 %v859_v31  ;;  %v1201_v42 = vunpack.c.h.bf16 %v859_v31  ;;  %v1791_v31 = vld [vmem:[%s2097_s2 + $0x10] sm:$0xff] }
 0x356   : > { %v973_v47 = vmul.f32 1.442695, %v970_v45  ;;  %v1086_v51 = vsub.f32 %v1076_v33, %v1084_v49 }
 0x358   : > { %1839 = vpow2.f32 %v973_v47  ;;  %v1089_v53 = vmul.f32 1.442695, %v1086_v51  ;;  %v1010_v56 = vpop.permute.xlu0 %1009 }
 0x359   : > { %1841 = vpow2.f32 %v1087_v48  ;;  %v1015_v60 = vsel %vm992_vm15, %v1010_v56, 0 }
 0x35a   : > { %1843 = vpow2.f32 %v1089_v53 }
 0x35e   : > { %v1840_v50 = vpop.eup %1839 }
 0x35f   : > { %v978_v52 = vsel %vm962_vm14, %v1840_v50, 0.0  ;;  %v1842_v54 = vpop.eup %1841 }
 0x360   : > { %979 = vadd.xlane.f32.xlu2 %v978_v52  ;;  %v1091_v55 = vsel %vm962_vm14, %v1842_v54, 0.0  ;;  %v1844_v58 = vpop.eup %1843 }
 0x361   : > { %v1094_v61 = vsel %vm962_vm14, %v1844_v58, 0.0 }
 0x366   : > { %1124 = vrot.lane.b32.xlu0 %v2136_v7, %s1932_s20 }
 0x368   : > { %1092 = vadd.xlane.f32.xlu2 %v1091_v55 }
 0x36b   : > { %v988_v57 = vpop.permute.xlu1 %987 }
 0x36c   : > { %v994_v59 = vsel %vm992_vm15, %v988_v57, 0 }
 0x36d   : > { %1003 = vmatpush.bf16.msra.mxu3 %v994_v59 }
 0x370   : > { %1095 = vadd.xlane.f32.xlu2 %v1094_v61 }
 0x371   : > { %1024 = vmatpush.bf16.msrb.mxu3 %v1015_v60 }
 0x373   : > { %v1104_v62 = vpop.permute.xlu1 %1103 }
 0x374   : > { %v1109_v63 = vsel %vm992_vm15, %v1104_v62, 0 }
 0x375   : > { %1118 = vmatpush.bf16.msrb.mxu2 %v1109_v63  ;;  %v1788_v63 = vld [vmem:[%s2087_s30 + $0x8] sm:$0xff] }
 0x379   : > { %1297 = vmatpush.bf16.msra.mxu2 %v1788_v63 }
 0x3c5   : > { %v977_v0 = vpop.xlane.xlu0 %976 }
 0x3c6   : > { %1845 = vrcp.f32 %v977_v0 }
 0x3cc   : > { %v1846_v1 = vpop.eup %1845 }
 0x3cd   : > { %v983_v2 = vmul.f32 %v1846_v1, %v1838_v41 }
 0x3cf   : > { %v985_v3 = vpack.c.bf16 %v983_v2, %v983_v2  ;;  %v1787_v2 = vld [vmem:[%s2087_s30] sm:$0xff] }
 0x3d0   : > { %1298 = vmatpush.bf16.msra.mxu2 %v1787_v2 }
 0x3d1   : > { %1713 = vmatmul.msk.bf16.vlgmr.msra.gmra.mxu3 %vm962_vm14, %v985_v3 }
 0x3d3   : > { %v980_v4 = vpop.xlane.xlu2 %979 }
 0x3d4   : > { %1847 = vrcp.f32 %v980_v4 }
 0x3d8   : > { %v1125_v5 = vpop.permute.xlu0 %1124 }
 0x3d9   : > { %v1130_v6 = vsel %vm992_vm15, %v1125_v5, 0 }
 0x3da   : > { %v1848_v7 = vpop.eup %1847  ;;  %1139 = vmatpush.bf16.msra.mxu3 %v1130_v6 }
 0x3db   : > { %v984_v8 = vmul.f32 %v1848_v7, %v1840_v50  ;;  %v1093_v9 = vpop.xlane.xlu2 %1092 }
 0x3dc   : > { %1849 = vrcp.f32 %v1093_v9 }
 0x3dd   : > { %v986_v10 = vpack.c.bf16 %v984_v8, %v984_v8 }
 0x3e1   : > { %1714 = vmatmul.msk.bf16.vlgmr.msrb.gmra.mxu3 %vm962_vm14, %v986_v10 }
 0x3e2   : > { %v1850_v11 = vpop.eup %1849 }
 0x3e3   : > { %v1099_v12 = vmul.f32 %v1850_v11, %v1842_v54  ;;  %v1096_v13 = vpop.xlane.xlu2 %1095 }
 0x3e4   : > { %1851 = vrcp.f32 %v1096_v13 }
 0x3e5   : > { %v1101_v14 = vpack.c.bf16 %v1099_v12, %v1099_v12  ;;  %1853 = vrcp.f32 %v1933_v46 }
 0x3e7   : > { %1717 = vmatmul.msk.bf16.vlgmr.msrb.gmra.mxu2 %vm962_vm14, %v1101_v14 }
 0x3ea   : > { %v1852_v15 = vpop.eup %1851 }
 0x3eb   : > { %v1100_v16 = vmul.f32 %v1852_v15, %v1844_v58  ;;  %v1854_v47 = vpop.eup %1853 }
 0x3ec   : > { %v1213_v48 = vmul.f32 32.0, %v1854_v47  ;;  %vm1217_vm0 = vweird.f32 %v1854_v47 }
 0x3ed   : > { %v1102_v17 = vpack.c.bf16 %v1100_v16, %v1100_v16 }
 0x3ee   : > { %v1214_v49 = vsub.f32 1.0, %v1213_v48 }
 0x3f0   : > { %v1215_v50 = vmul.f32 %v1854_v47, %v1214_v49 }
 0x3f1   : > { %1718 = vmatmul.msk.bf16.vlgmr.msra.gmra.mxu3 %vm962_vm14, %v1102_v17 }
 0x3f2   : > { %v1216_v51 = vadd.f32 %v1854_v47, %v1215_v50 }
 0x3f4   : > { %v2178_v52 = vsel %vm1217_vm0, %v1854_v47, %v1216_v51 }
 0x454   : > { %v1005_v20 = vpop.f32.mrf.mxu3 }
 0x45c   : > { %v1007_v21 = vpop.f32.mrf.mxu3 }
 0x464   : > { %v1026_v22 = vpop.f32.mrf.mxu3 }
 0x465   : > { %v1030_v23 = vpack.c.bf16 %v1026_v22, %v1005_v20 }
 0x467   : > { %1728 = vmatmul.msk.bf16.vlgmr.msra.gmra.mxu1 %vm918_vm13, %v1030_v23  ;;  %v1832_v23 = vld [vmem:[%s2307_s24] ss:$0 sm:$0xff] }
 0x46a   : > { %v1120_v24 = vpop.f32.mrf.mxu2 }
 0x46c   : > { %v1028_v25 = vpop.f32.mrf.mxu3 }
 0x472   : > { %v1122_v26 = vpop.f32.mrf.mxu2 }
 0x474   : > { %v1141_v27 = vpop.f32.mrf.mxu3 }
 0x475   : > { %v1145_v28 = vpack.c.bf16 %v1141_v27, %v1120_v24 }
 0x477   : > { %1723 = vmatmul.msk.bf16.vlgmr.msra.gmra.mxu0 %vm918_vm13, %v1145_v28  ;;  %vm1438_vm13 = vcmask 257024  }
 0x47c   : > { %v1143_v29 = vpop.f32.mrf.mxu3 }
 0x4e4   : > { %v1189_v30 = vpop.f32.mrf.mxu1 }
 0x4ec   : > { %v1191_v39 = vpop.f32.mrf.mxu1 }
 0x4f4   : > { %v1166_v33 = vpop.f32.mrf.mxu0 }
 0x4f5   : > { %v1190_v34 = vadd.f32 %v1189_v30, %v1166_v33  ;;  %v1792_v30 = vld [vmem:[%s2097_s2 + $0x18] sm:$0xff]  ;;  %v1833_v33 = vld [vmem:[%s755_s6] ss:$0 sm:$0xff] }
 0x4f6   : > { %1368 = vmatpush.bf16.msrb.mxu3 %v1792_v30  ;;  %v1836_v30 = vld [vmem:[%s769_s10] ss:$0 sm:$0xff] }
 0x4f7   : > { %v1198_v36 = vadd.f32 %v1830_v32, %v1190_v34  ;;  %v1789_v34 = vld [vmem:[%s2097_s2] sm:$0xff] }
 0x4f9   : > { %v1202_v37 = vadd.f32 %v1200_v35, %v1198_v36 }
 0x4fa   : > { %1369 = vmatpush.bf16.msrb.mxu3 %v1791_v31 }
 0x4fb   : > { %v1206_v38 = vsel %vm889_vm12, %v1202_v37, 0.0 }
 0x4fc   : > { %v1168_v40 = vpop.f32.mrf.mxu0  ;;  %1207 = vadd.xlane.f32.xlu2 %v1206_v38 }
 0x4fd   : > { %v1192_v41 = vadd.f32 %v1191_v39, %v1168_v40 }
 0x4ff   : > { %v1199_v43 = vadd.f32 %v1830_v32, %v1192_v41  ;;  %v1790_v32 = vld [vmem:[%s2097_s2 + $0x8] sm:$0xff]  ;;  %s2311_s2 = sld [smem:[#allocation21_spill]] (!%p1755_p5) }
 0x500   : > { %1370 = vmatpush.bf16.msrb.mxu3 %v1790_v32 }
 0x501   : > { %v1203_v44 = vadd.f32 %v1201_v42, %v1199_v43 }
 0x503   : > { %v1209_v45 = vsel %vm889_vm12, %v1203_v44, 0.0 }
 0x504   : > { %1210 = vadd.xlane.f32.xlu1 %v1209_v45  ;;  %1371 = vmatpush.bf16.msrb.mxu3 %v1789_v34 }
 0x56f   : > { %v1208_v53 = vpop.xlane.xlu2 %1207 }
 0x570   : > { %v1219_v54 = vmul.f32 %v2178_v52, %v1208_v53 }
 0x572   : > { %v1221_v55 = vsub.f32 %v1202_v37, %v1219_v54 }
 0x574   : > { %v1223_v56 = vmul.f32 %v1221_v55, %v1221_v55 }
 0x576   : > { %v1225_v57 = vsel %vm889_vm12, %v1223_v56, 0.0 }
 0x577   : > { %v1211_v58 = vpop.xlane.xlu1 %1210  ;;  %1226 = vadd.xlane.f32.xlu0 %v1225_v57 }
 0x578   : > { %v1220_v59 = vmul.f32 %v2178_v52, %v1211_v58 }
 0x57a   : > { %v1222_v60 = vsub.f32 %v1203_v44, %v1220_v59  ;;  %v1834_v59 = vld [vmem:[%s763_s26] ss:$0 sm:$0xff] }
 0x57c   : > { %v1224_v61 = vmul.f32 %v1222_v60, %v1222_v60 }
 0x57e   : > { %v1228_v62 = vsel %vm889_vm12, %v1224_v61, 0.0 }
 0x57f   : > { %1229 = vadd.xlane.f32.xlu2 %v1228_v62 }
 0x5ea   : > { %v1227_v0 = vpop.xlane.xlu0 %1226 }
 0x5eb   : > { %v1231_v1 = vmul.f32 %v1227_v0, %v2178_v52 }
 0x5ed   : > { %v1233_v3 = vadd.f32 1e-12, %v1231_v1 }
 0x5ef   : > { %1855 = vrsqrt.f32 %v1233_v3  ;;  %vm1241_vm2 = vweird.f32 %v1233_v3 }
 0x5f2   : > { %v1230_v4 = vpop.xlane.xlu2 %1229 }
 0x5f3   : > { %v1232_v5 = vmul.f32 %v1230_v4, %v2178_v52 }
 0x5f5   : > { %v1856_v6 = vpop.eup %1855  ;;  %v1234_v7 = vadd.f32 1e-12, %v1232_v5 }
 0x5f6   : > { %v1236_v8 = vmul.f32 %v1856_v6, %v1233_v3  ;;  %vm1242_vm1 = vweird.f32 %v1856_v6 }
 0x5f7   : > { %1857 = vrsqrt.f32 %v1234_v7  ;;  %vm1243_vm3 = vmor %vm1241_vm2, %vm1242_vm1  ;;  %vm1251_vm5 = vweird.f32 %v1234_v7 }
 0x5f8   : > { %v1237_v9 = vmul.f32 %v1856_v6, %v1236_v8 }
 0x5fa   : > { %v1238_v10 = vmul.f32 0.5, %v1237_v9 }
 0x5fc   : > { %v1239_v11 = vsub.f32 1.5, %v1238_v10 }
 0x5fd   : > { %v1858_v12 = vpop.eup %1857 }
 0x5fe   : > { %v1240_v13 = vmul.f32 %v1856_v6, %v1239_v11  ;;  %v1246_v14 = vmul.f32 %v1858_v12, %v1234_v7  ;;  %vm1252_vm4 = vweird.f32 %v1858_v12 }
 0x5ff   : > { %vm1253_vm6 = vmor %vm1251_vm5, %vm1252_vm4 }
 0x600   : > { %v1247_v15 = vmul.f32 %v1858_v12, %v1246_v14  ;;  %v1244_v16 = vsel %vm1243_vm3, %v1856_v6, %v1240_v13 }
 0x601   : > { %v1255_v20 = vmul.f32 %v1244_v16, %v1221_v55 }
 0x602   : > { %v1248_v17 = vmul.f32 0.5, %v1247_v15 }
 0x603   : > { %v1260_v24 = vmul.f32 %v1831_v19, %v1255_v20 }
 0x604   : > { %v1249_v18 = vsub.f32 1.5, %v1248_v17 }
 0x605   : > { %v1265_v27 = vadd.f32 %v1832_v23, %v1260_v24 }
 0x606   : > { %v1250_v21 = vmul.f32 %v1858_v12, %v1249_v18 }
 0x608   : > { %v1254_v22 = vsel %vm1253_vm6, %v1858_v12, %v1250_v21 }
 0x609   : > { %v1256_v25 = vmul.f32 %v1254_v22, %v1222_v60 }
 0x60b   : > { %v1261_v26 = vmul.f32 %v1831_v19, %v1256_v25 }
 0x60d   : > { %v1266_v28 = vadd.f32 %v1832_v23, %v1261_v26 }
 0x60f   : > { %v1267_v29 = vpack.c.bf16 %v1266_v28, %v1265_v27 }
 0x611   : > { %1737 = vmatmul.msk.bf16.vlgmr.msra.gmra.mxu2 %vm889_vm12, %v1267_v29 }
 0x694   : > { %v1300_v35 = vpop.f32.mrf.mxu2 }
 0x695   : > { %v1301_v36 = vadd.f32 %v1833_v33, %v1300_v35 }
 0x697   : > { %v1305_v37 = vmul.f32 %v1301_v36, %v1301_v36 }
 0x699   : > { %v1307_v38 = vmul.f32 %v1305_v37, %v1301_v36 }
 0x69b   : > { %v1309_v39 = vmul.f32 0.044715, %v1307_v38 }
 0x69c   : > { %v1302_v40 = vpop.f32.mrf.mxu2 }
 0x69d   : > { %v1311_v41 = vadd.f32 %v1309_v39, %v1301_v36  ;;  %v1303_v42 = vadd.f32 %v1833_v33, %v1302_v40 }
 0x69f   : > { %v1313_v43 = vmul.f32 0.7978846, %v1311_v41  ;;  %v1306_v44 = vmul.f32 %v1303_v42, %v1303_v42 }
 0x6a1   : > { %v1308_v45 = vmul.f32 %v1306_v44, %v1303_v42  ;;  %1859 = vtanh.f32 %v1313_v43 }
 0x6a3   : > { %v1310_v46 = vmul.f32 0.044715, %v1308_v45 }
 0x6a5   : > { %v1312_v47 = vadd.f32 %v1310_v46, %v1303_v42 }
 0x6a7   : > { %v1314_v48 = vmul.f32 0.7978846, %v1312_v47  ;;  %v1860_v49 = vpop.eup %1859 }
 0x6a8   : > { %v1317_v50 = vadd.f32 1.0, %v1860_v49 }
 0x6a9   : > { %1861 = vtanh.f32 %v1314_v48 }
 0x6aa   : > { %v1319_v53 = vmul.f32 0.5, %v1317_v50 }
 0x6ac   : > { %v1321_v56 = vmul.f32 %v1319_v53, %v1301_v36 }
 0x6af   : > { %v1862_v51 = vpop.eup %1861 }
 0x6b0   : > { %v1318_v54 = vadd.f32 1.0, %v1862_v51 }
 0x6b2   : > { %v1320_v55 = vmul.f32 0.5, %v1318_v54 }
 0x6b4   : > { %v1322_v57 = vmul.f32 %v1320_v55, %v1303_v42 }
 0x6b6   : > { %v1323_v58 = vpack.c.bf16 %v1322_v57, %v1321_v56 }
 0x6b8   : > { %1754 = vmatmul.msk.bf16.vlgmr.msrb.gmra.mxu3 %vm1360_vm7, %v1323_v58 }
 0x73b   : > { %v1373_v60 = vpop.f32.mrf.mxu3 }
 0x73c   : > { %v1374_v61 = vadd.f32 %v1834_v59, %v1373_v60 }
 0x73e   : > { %v1378_v62 = vadd.f32 %v1374_v61, %v1265_v27 }
 0x740   : > { %v1382_v63 = vsel %vm889_vm12, %v1378_v62, 0.0 }
 0x741   : > { %1383 = vadd.xlane.f32.xlu2 %v1382_v63 }
 0x743   : > { %v1375_v0 = vpop.f32.mrf.mxu3 }
 0x744   : > { %v1376_v1 = vadd.f32 %v1834_v59, %v1375_v0 }
 0x746   : > { %v1379_v2 = vadd.f32 %v1376_v1, %v1266_v28  ;;  %v1835_v28 = vld [vmem:[%s766_s4] ss:$0 sm:$0xff] }
 0x748   : > { %v1385_v3 = vsel %vm889_vm12, %v1379_v2, 0.0 }
 0x749   : > { %1386 = vadd.xlane.f32.xlu2 %v1385_v3 }
 0x7b4   : > { %v1384_v4 = vpop.xlane.xlu2 %1383 }
 0x7b5   : > { %v1388_v5 = vmul.f32 %v1384_v4, %v2178_v52 }
 0x7b7   : > { %v1390_v6 = vsub.f32 %v1378_v62, %v1388_v5 }
 0x7b9   : > { %v1392_v7 = vmul.f32 %v1390_v6, %v1390_v6 }
 0x7bb   : > { %v1394_v8 = vsel %vm889_vm12, %v1392_v7, 0.0 }
 0x7bc   : > { %1395 = vadd.xlane.f32.xlu2 %v1394_v8  ;;  %v1387_v9 = vpop.xlane.xlu2 %1386 }
 0x7bd   : > { %v1389_v10 = vmul.f32 %v1387_v9, %v2178_v52 }
 0x7bf   : > { %v1391_v11 = vsub.f32 %v1379_v2, %v1389_v10 }
 0x7c1   : > { %v1393_v12 = vmul.f32 %v1391_v11, %v1391_v11 }
 0x7c3   : > { %v1397_v13 = vsel %vm889_vm12, %v1393_v12, 0.0 }
 0x7c4   : > { %1398 = vadd.xlane.f32.xlu2 %v1397_v13 }
 0x82f   : > { %v1396_v14 = vpop.xlane.xlu2 %1395 }
 0x830   : > { %v1400_v15 = vmul.f32 %v1396_v14, %v2178_v52 }
 0x832   : > { %v1402_v16 = vadd.f32 1e-12, %v1400_v15 }
 0x834   : > { %1863 = vrsqrt.f32 %v1402_v16  ;;  %vm1410_vm9 = vweird.f32 %v1402_v16 }
 0x837   : > { %v1399_v17 = vpop.xlane.xlu2 %1398 }
 0x838   : > { %v1401_v18 = vmul.f32 %v1399_v17, %v2178_v52 }
 0x83a   : > { %v1864_v19 = vpop.eup %1863  ;;  %v1403_v20 = vadd.f32 1e-12, %v1401_v18 }
 0x83b   : > { %v1405_v21 = vmul.f32 %v1864_v19, %v1402_v16  ;;  %vm1411_vm8 = vweird.f32 %v1864_v19 }
 0x83c   : > { %1865 = vrsqrt.f32 %v1403_v20  ;;  %vm1412_vm10 = vmor %vm1410_vm9, %vm1411_vm8  ;;  %vm1420_vm14 = vweird.f32 %v1403_v20 }
 0x83d   : > { %v1406_v22 = vmul.f32 %v1864_v19, %v1405_v21 }
 0x83f   : > { %v1407_v23 = vmul.f32 0.5, %v1406_v22 }
 0x841   : > { %v1408_v24 = vsub.f32 1.5, %v1407_v23 }
 0x842   : > { %v1866_v25 = vpop.eup %1865 }
 0x843   : > { %v1409_v26 = vmul.f32 %v1864_v19, %v1408_v24  ;;  %v1415_v27 = vmul.f32 %v1866_v25, %v1403_v20  ;;  %vm1421_vm11 = vweird.f32 %v1866_v25 }
 0x844   : > { %vm1422_vm15 = vmor %vm1420_vm14, %vm1421_vm11 }
 0x845   : > { %v1413_v52 = vsel %vm1412_vm10, %v1864_v19, %v1409_v26  ;;  %v1416_v29 = vmul.f32 %v1866_v25, %v1415_v27 }
 0x846   : > { %v1424_v31 = vmul.f32 %v1413_v52, %v1390_v6 }
 0x847   : > { %v1417_v32 = vmul.f32 0.5, %v1416_v29 }
 0x848   : > { %v1429_v33 = vmul.f32 %v1835_v28, %v1424_v31 }
 0x849   : > { %v1418_v34 = vsub.f32 1.5, %v1417_v32 }
 0x84a   : > { %v1434_v35 = vadd.f32 %v1836_v30, %v1429_v33 }
 0x84b   : > { %v1419_v36 = vmul.f32 %v1866_v25, %v1418_v34 }
 0x84c   : > { %v1436_v37 = vpack.c.bf16 %v1434_v35, %v1434_v35 }
 0x84d   : > { %v1423_v38 = vsel %vm1422_vm15, %v1866_v25, %v1419_v36 }
 0x84e   : > { %1439 = vst.msk [vmem:[#allocation2] sm:$0xf] %vm1438_vm13, %v1436_v37  ;;  %v1425_v39 = vmul.f32 %v1423_v38, %v1391_v11 }
 0x850   : > { %v1430_v40 = vmul.f32 %v1835_v28, %v1425_v39 }
 0x852   : > { %v1435_v41 = vadd.f32 %v1836_v30, %v1430_v40  ;;  %1444 = sbr.rel (%p1755_p5) target bundleno = 2414 (0x96e), region = 104 }
 0x854   : > { %v1437_v42 = vpack.c.bf16 %v1435_v41, %v1435_v41 }
 0x856   : > { %1440 = vst.msk [vmem:[#allocation2 + $0x4] sm:$0xf] %vm1438_vm13, %v1437_v42 }
 0x857   : > { %v1794_v43 = vld [vmem:[%s2275_s16 + $0x8] sm:$0xff]  ;;  %v1455_v44 = vunpack.c.l.b16 %v1436_v37  ;;  %v1456_v45 = vunpack.c.l.b16 %v1437_v42  ;;  %vm1458_vm0 = vcmask 1041409   ;;  %v1793_v46 = vld [vmem:[%s2275_s16] sm:$0xff] }
 0x858   : > { %1482 = vmatpush.bf16.msra.mxu0 %v1794_v43  ;;  %v1796_v50 = vld [vmem:[%s2309_s29 + $0x8] sm:$0xff]  ;;  %v1795_v51 = vld [vmem:[%s2309_s29] sm:$0xff] }
 0x859   : > { %v1457_v47 = vrot.slane %v1456_v45, 7  ;;  %1520 = vmatpush.bf16.msra.mxu1 %v1796_v50  ;;  %v1867_v53 = vld [vmem:[%s2310_s17] ss:$0 sm:$0xff] }
 0x85a   : > { %v1868_v59 = vld [vmem:[%s2311_s2] ss:$0 sm:$0xff] }
 0x85b   : > { %v1459_v48 = vsel %vm1458_vm0, %v1457_v47, %v1455_v44 }
 0x85c   : > { %v1460_v49 = vpack.c.b16 %v1459_v48, %v1459_v48  ;;  %1483 = vmatpush.bf16.msra.mxu0 %v1793_v46 }
 0x85d   : > { %1521 = vmatpush.bf16.msra.mxu1 %v1795_v51 }
 0x85f   : > { %1764 = vmatmul.msk.bf16.vlgmr.msra.gmra.mxu0 %vm889_vm12, %v1460_v49 }
 0x8dc   : > { %v1485_v54 = vpop.f32.mrf.mxu0 }
 0x8dd   : > { %v1486_v55 = vadd.f32 %v1867_v53, %v1485_v54 }
 0x8df   : > { %1869 = vtanh.f32 %v1486_v55 }
 0x8e4   : > { %v1487_v56 = vpop.f32.mrf.mxu0 }
 0x8e5   : > { %v1870_v57 = vpop.eup %1869 }
 0x8e6   : > { %v1490_v58 = vpack.c.bf16 %v1870_v57, %v1870_v57 }
 0x8e8   : > { %1773 = vmatmul.msk.bf16.vlgmr.msra.gmra.mxu1 %vm889_vm12, %v1490_v58 }
 0x965   : > { %v1523_v60 = vpop.f32.mrf.mxu1 }
 0x966   : > { %v1524_v61 = vadd.f32 %v1868_v59, %v1523_v60 }
 0x968   : > { %1527 = vst [vmem:[#allocation6] sm:$0x3] %v1524_v61 }
 0x96d   : > { %v1525_v62 = vpop.f32.mrf.mxu1 }
 0x96e PF: > { %p1801_p6 = scmp.eq.s32.totalorder %s2049_s25, 1  ;;  %s1934_s26 = smov [#allocation6]  }
 0x96f   : > { %s1534_s28 = sshll.u32 %s1934_s26, 4  ;;  %s2312_s27 = sld [smem:[#allocation22_spill]]  ;;  %s1535_s28 = int_to_ptr.vmem [resolvable:$true] %s1534_s28 }
 0x975   : > { %s1536_s10 = sshll.u32 %s2312_s27, 4  ;;  %s1537_s10 = int_to_ptr.hbm [resolvable:$true] %s1536_s10 }
 0x976   : > { %1798 = dma.vmem_to_hbm [thread:$0]  (%p1801_p6), %s1535_s28, 32, %s1537_s10, [#allocation7]  }
 0x977   : > { %1918 = dma.done.wait (%p1801_p6), [#allocation7], 32  }
 0x978   : > { %1920 = vsyncadd (%p1801_p6), [#allocation7], 4294967264 }
 0x979 PF: > { %s2313_s14 = sld [smem:[#allocation10_spill]] }
 0x97f   : > { %s39_s2 = sadd.s32 1, %s2313_s14  }
 0x980   : > { %p36_p7 = scmp.ge.s32.totalorder %s39_s2, 4  }
 0x982   :  { %38 = sbr.rel (!%p36_p7) target bundleno = 25 (0x19), region = 164 }
 0x987   :  { %1550 = vsyncpa [#allocation7], 1 }
 0x988   :  { %1552 = vsyncpa [#allocation7 + $0x1], 1 }

</bundles_post_ra>
